<compile_context>
chip_gen: v6e
topology: v6e:2x2x1
jax: 0.10.0
libtpu: 0.0.40
codegen_flags: <defaults>
</compile_context>

<pallas_src>
import functools

import jax
import jax.numpy as jnp
from jax import lax
from jax.experimental import pallas as pl
from jax.experimental.pallas import tpu as pltpu

EPS = 1e-5  # PyTorch BatchNorm default eps


def _round_up(x, m):
    return ((x + m - 1) // m) * m


# ---------------------------------------------------------------------------
# The single fused Pallas kernel: 8 matmuls + bias + ReLU, all in VMEM
# ---------------------------------------------------------------------------
def _stmnet_kernel(x_ref,
                   wA_ref, bA_ref, wB_ref, bB_ref,
                   wC_ref, bC_ref, wD_ref, bD_ref,
                   w1_ref, b1_ref, w3_ref, b3_ref,
                   w4_ref, b4_ref, w5_ref, b5_ref,
                   o_ref):
    def layer(h, w_ref, b_ref, relu=True):
        # bf16 MXU operands, f32 accumulation; bias + ReLU tail stays f32 (VPU).
        y = jnp.dot(h.astype(w_ref.dtype), w_ref[...],
                    preferred_element_type=jnp.float32)
        y = y + b_ref[...]
        return jnp.maximum(y, 0.0) if relu else y

    h = x_ref[...]                       # (tb, 64) f32
    h = layer(h, wA_ref, bA_ref)         # Conv1d(1->6,k=5,same)+BN+ReLU  -> (tb, 384)
    h = layer(h, wB_ref, bB_ref)         # Conv1d(6->8,k=3,same)+BN+ReLU  -> (tb, 512)
    h = layer(h, wC_ref, bC_ref)         # Conv2d(8->8,k=3)+BN+ReLU       -> (tb, 384) (288 + 96 zero pad)
    h = layer(h, wD_ref, bD_ref)         # Conv2d(8->16,k=3)+BN+ReLU      -> (tb, 256)
    h = layer(h, w1_ref, b1_ref)         # fc1 + ReLU                     -> (tb, 64)
    h = layer(h, w3_ref, b3_ref)         # fc3 + ReLU                     -> (tb, 32)
    h = layer(h, w4_ref, b4_ref)         # fc4 + ReLU                     -> (tb, 16)
    h = layer(h, w5_ref, b5_ref, relu=False)   # fc5 (lane-dense, col 0)  -> (tb, 128)
    o_ref[...] = h.astype(o_ref.dtype)


def stmnet_forward(x, q, *, tb=1024):
    """x: (N, 64) f32 == PyTorch input (N, 1, 64) with the channel squeezed.
    Returns (N, 1) f32."""
    N, L = x.shape
    assert L == 64
    # Clamp the batch tile to the (8-aligned) batch; keep it a multiple of 8.
    tb = _round_up(min(tb, _round_up(N, 8)), 8)
    steps = pl.cdiv(N, tb)
    # Keep the parallel batch-grid step count even (>= 2) so v7x's two
    # TensorCores get equal work; at production sizes (16384 / 1024 = 16) this
    # adds no padding.  Harmless on single-TC v5e/v6e.
    if steps > 1 and steps % 2 == 1:
        steps += 1
    Np = steps * tb
    if Np != N:
        x = jnp.pad(x, ((0, Np - N), (0, 0)))   # zero rows; sliced off below

    weights = [q['A'], q['bA'], q['B'], q['bB'], q['C'], q['bC'], q['D'], q['bD'],
               q['w1'], q['b1'], q['w3'], q['b3'], q['w4'], q['b4'], q['w5'], q['b5']]

    args = []
    in_specs = [pl.BlockSpec((tb, 64), lambda i: (i, 0))]   # batch tile of x
    for w in weights:
        if w.ndim == 1:
            w = w.reshape(1, -1)
        args.append(w)
        # full array, constant block index -> DMA'd once, VMEM-resident (~1 MB bf16)
        in_specs.append(pl.BlockSpec(w.shape, lambda i: (0, 0)))

    out = pl.pallas_call(
        _stmnet_kernel,
        out_shape=jax.ShapeDtypeStruct((Np, 128), jnp.float32),
        grid_spec=pltpu.PrefetchScalarGridSpec(
            num_scalar_prefetch=0,
            grid=(steps,),
            in_specs=in_specs,
            out_specs=pl.BlockSpec((tb, 128), lambda i: (i, 0)),
        ),
        compiler_params=pltpu.CompilerParams(
            dimension_semantics=("parallel",),
            vmem_limit_bytes=48 * 1024 * 1024),
    )(x, *args)
    return out[:N, :1]


# ---------------------------------------------------------------------------
# Parameter init (deterministic, synthetic)
# ---------------------------------------------------------------------------
def init_params(key):
    ks = iter(jax.random.split(key, 40))

    def nrm(shape, scale):
        return scale * jax.random.normal(next(ks), shape, jnp.float32)

    def bn_params(c):
        gamma = 1.0 + 0.1 * jax.random.normal(next(ks), (c,), jnp.float32)
        beta = 0.1 * jax.random.normal(next(ks), (c,), jnp.float32)
        mean = 0.1 * jax.random.normal(next(ks), (c,), jnp.float32)
        var = 0.8 + 0.4 * jax.random.uniform(next(ks), (c,), jnp.float32)
        return gamma, beta, mean, var

    p = {}
    p['w1d1'], p['b1d1'], p['bn1d1'] = nrm((6, 1, 5), 5.0 ** -0.5), nrm((6,), 0.1), bn_params(6)
    p['w1d2'], p['b1d2'], p['bn1d2'] = nrm((8, 6, 3), 18.0 ** -0.5), nrm((8,), 0.1), bn_params(8)
    p['wc1'], p['bc1'], p['bnc1'] = nrm((8, 8, 3, 3), 72.0 ** -0.5), nrm((8,), 0.1), bn_params(8)
    p['wc2'], p['bc2'], p['bnc2'] = nrm((16, 8, 3, 3), 72.0 ** -0.5), nrm((16,), 0.1), bn_params(16)
    p['wfc1'], p['bfc1'] = nrm((64, 256), 1.0 / 16.0), nrm((64,), 0.1)
    p['wfc3'], p['bfc3'] = nrm((32, 64), 1.0 / 8.0), nrm((32,), 0.1)
    p['wfc4'], p['bfc4'] = nrm((16, 32), 32.0 ** -0.5), nrm((16,), 0.1)
    p['wfc5'], p['bfc5'] = nrm((1, 16), 0.25), nrm((1,), 0.1)
    return p


def fold_conv_bn(w, b, bn):
    """Fold eval-mode BatchNorm into the preceding conv (exact for inference)."""
    gamma, beta, mean, var = bn
    scale = gamma / jnp.sqrt(var + EPS)
    w_f = w * scale.reshape((-1,) + (1,) * (w.ndim - 1))
    b_f = (b - mean) * scale + beta
    return w_f, b_f


def prepare_dense(p, *, weight_dtype=jnp.bfloat16):
    """Fold BN into each conv and lower every conv to ONE dense (K_in, K_out)
    matrix acting on a flattened per-sample activation vector.  Column orderings
    reproduce PyTorch's split/stack/view and NCHW flatten exactly, so the fc1
    weights apply unchanged.  Weight matrices are stored in `weight_dtype`
    (bf16 by default: explicit MXU-operand precision); biases stay f32."""
    w1f, b1f = fold_conv_bn(p['w1d1'], p['b1d1'], p['bn1d1'])     # (6,1,5), (6,)
    w2f, b2f = fold_conv_bn(p['w1d2'], p['b1d2'], p['bn1d2'])     # (8,6,3), (8,)
    wc1f, bc1f = fold_conv_bn(p['wc1'], p['bc1'], p['bnc1'])      # (8,8,3,3), (8,)
    wc2f, bc2f = fold_conv_bn(p['wc2'], p['bc2'], p['bnc2'])      # (16,8,3,3), (16,)

    L = 64
    lin = jnp.arange(L)[:, None]
    lout = jnp.arange(L)[None, :]

    # Conv1d(1->6, k=5, 'same'):  out[co, l] = sum_k w[co,0,k] * x[l + k - 2]
    # A[l_in, co*64 + l_out] = w1f[co, 0, l_in - l_out + 2]
    S1 = jnp.stack([(lin == lout + (k - 2)).astype(jnp.float32) for k in range(5)])
    A = jnp.einsum('kio,ck->ico', S1, w1f[:, 0, :]).reshape(L, 6 * L)        # (64, 384)
    bA = jnp.repeat(b1f, L)                                                  # (384,)

    # Conv1d(6->8, k=3, 'same'):  B[(ci, l_in), (co, l_out)]
    S2 = jnp.stack([(lin == lout + (k - 1)).astype(jnp.float32) for k in range(3)])
    B = jnp.einsum('kio,cdk->dico', S2, w2f).reshape(6 * L, 8 * L)           # (384, 512)
    bB = jnp.repeat(b2f, L)                                                  # (512,)

    # split(.,8,dim=2)+stack(dim=3)+view => x0[n,c,h,w] = h2[n, c*64 + w*8 + h]
    # Conv2d(8->8, k=3, valid) on that NCHW (8,8,8) map; output cols (co, i*6+j)
    ii, jj = jnp.meshgrid(jnp.arange(6), jnp.arange(6), indexing='ij')
    T1 = jnp.stack([jnp.stack([
        jax.nn.one_hot(((jj + kj) * 8 + (ii + ki)).reshape(-1), 64,
                       dtype=jnp.float32).T
        for kj in range(3)]) for ki in range(3)])                            # (3,3,64,36)
    C = jnp.einsum('xylm,cdxy->dlcm', T1, wc1f).reshape(8 * 64, 8 * 36)      # (512, 288)
    bC = jnp.repeat(bc1f, 36)                                                # (288,)

    # Conv2d(8->16, k=3, valid): input cols (ci, i*6+j) -> output cols (co, i*4+j)
    i2, j2 = jnp.meshgrid(jnp.arange(4), jnp.arange(4), indexing='ij')
    T2 = jnp.stack([jnp.stack([
        jax.nn.one_hot(((i2 + ki) * 6 + (j2 + kj)).reshape(-1), 36,
                       dtype=jnp.float32).T
        for kj in range(3)]) for ki in range(3)])                            # (3,3,36,16)
    D = jnp.einsum('xyst,cdxy->dsct', T2, wc2f).reshape(8 * 36, 16 * 16)     # (288, 256)
    bD = jnp.repeat(bc2f, 16)                                                # (256,)
    # Output column order (co, i, j) == PyTorch's NCHW x2.view(N, -1) flatten.

    # Pad the 288-wide interface to 384 (3x128): zero cols on C/bC, zero rows
    # on D.  The padded activations are relu(0 + 0) = 0 and hit zero rows of D,
    # so results are unchanged; the remainder tiles disappear.
    C = jnp.pad(C, ((0, 0), (0, 96)))          # (512, 384)
    bC = jnp.pad(bC, (0, 96))                  # (384,)
    D = jnp.pad(D, ((0, 96), (0, 0)))          # (384, 256)

    # Lane-dense final output: pad fc5 to 128 output columns (cols 1..127 are
    # exactly zero); the wrapper slices column 0.
    w5 = jnp.pad(p['wfc5'].T, ((0, 0), (0, 127)))   # (16, 128)
    b5 = jnp.pad(p['bfc5'], (0, 127))               # (128,)

    wd = weight_dtype
    return dict(
        A=A.astype(wd), bA=bA, B=B.astype(wd), bB=bB,
        C=C.astype(wd), bC=bC, D=D.astype(wd), bD=bD,
        w1=p['wfc1'].T.astype(wd), b1=p['bfc1'],
        w3=p['wfc3'].T.astype(wd), b3=p['bfc3'],
        w4=p['wfc4'].T.astype(wd), b4=p['bfc4'],
        w5=w5.astype(wd), b5=b5)


# ---------------------------------------------------------------------------
# Independent pure-JAX reference (mirrors PyTorch eval-mode forward)
# ---------------------------------------------------------------------------
def reference_forward(x, p):
    N = x.shape[0]

    def bn(y, bn_p):
        gamma, beta, mean, var = bn_p
        s = (1, -1) + (1,) * (y.ndim - 2)
        return (y - mean.reshape(s)) / jnp.sqrt(var.reshape(s) + EPS) \
            * gamma.reshape(s) + beta.reshape(s)

    dn = ('NCHW', 'OIHW', 'NCHW')
    # Conv1d layers expressed as 2-D convs with a dummy H axis.
    y = lax.conv_general_dilated(x[:, None, None, :], p['w1d1'][:, :, None, :],
                                 (1, 1), [(0, 0), (2, 2)], dimension_numbers=dn)
    y = jax.nn.relu(bn(y + p['b1d1'][None, :, None, None], p['bn1d1']))[:, :, 0, :]
    y = lax.conv_general_dilated(y[:, :, None, :], p['w1d2'][:, :, None, :],
                                 (1, 1), [(0, 0), (1, 1)], dimension_numbers=dn)
    y = jax.nn.relu(bn(y + p['b1d2'][None, :, None, None], p['bn1d2']))[:, :, 0, :]
    x0 = jnp.stack(jnp.split(y, 8, axis=2), axis=3)                          # (N,8,8,8)
    z = lax.conv_general_dilated(x0, p['wc1'], (1, 1), 'VALID', dimension_numbers=dn)
    z = jax.nn.relu(bn(z + p['bc1'][None, :, None, None], p['bnc1']))
    z = lax.conv_general_dilated(z, p['wc2'], (1, 1), 'VALID', dimension_numbers=dn)
    z = jax.nn.relu(bn(z + p['bc2'][None, :, None, None], p['bnc2']))
    f = z.reshape(N, -1)
    f = jax.nn.relu(f @ p['wfc1'].T + p['bfc1'])
    f = jax.nn.relu(f @ p['wfc3'].T + p['bfc3'])
    f = jax.nn.relu(f @ p['wfc4'].T + p['bfc4'])
    return f @ p['wfc5'].T + p['bfc5']


if __name__ == "__main__":
    key = jax.random.PRNGKey(0)
    k_x, k_p = jax.random.split(key)
    # Small test shapes (original module hard-codes batch 16384, L=64).
    # tb=16 here so the test exercises a multi-step parallel batch grid plus the
    # even-step / padded-batch path (48 rows, tb=16 -> 4 steps, 16 pad rows);
    # production use: default tb=1024 (batch 16384 -> 16 grid steps, no padding).
    N, L = 48, 64
    x = jax.random.normal(k_x, (N, L), jnp.float32)

    raw = init_params(k_p)
    params = prepare_dense(raw)           # one-time weight preprocessing (bf16 weights)

    fwd = jax.jit(functools.partial(stmnet_forward, tb=16))
    out = jax.block_until_ready(fwd(x, params))
    assert out.shape == (N, 1) and out.dtype == jnp.float32

    ref = jax.block_until_ready(reference_forward(x, raw))
    # Tolerance reflects explicit bf16 MXU operands across an 8-matmul chain
    # (the previous f32 path was already bf16-truncated by DEFAULT precision);
    # structural bugs would show up as O(1) errors.
    if not jnp.allclose(out, ref, atol=2e-2, rtol=2e-2):
        max_err = float(jnp.max(jnp.abs(out - ref)))
        raise AssertionError(f"Pallas output mismatch vs reference, max|err|={max_err}")

    print("KERNEL_OK")
</pallas_src>

<mosaic_0001>
module attributes {stable_mosaic.version = 11 : i64} {
  func.func @_stmnet_kernel(%arg0: i32, %arg1: memref<16x64xf32, #tpu.memory_space<vmem>>, %arg2: memref<64x384xbf16, #tpu.memory_space<vmem>>, %arg3: memref<1x384xf32, #tpu.memory_space<vmem>>, %arg4: memref<384x512xbf16, #tpu.memory_space<vmem>>, %arg5: memref<1x512xf32, #tpu.memory_space<vmem>>, %arg6: memref<512x384xbf16, #tpu.memory_space<vmem>>, %arg7: memref<1x384xf32, #tpu.memory_space<vmem>>, %arg8: memref<384x256xbf16, #tpu.memory_space<vmem>>, %arg9: memref<1x256xf32, #tpu.memory_space<vmem>>, %arg10: memref<256x64xbf16, #tpu.memory_space<vmem>>, %arg11: memref<1x64xf32, #tpu.memory_space<vmem>>, %arg12: memref<64x32xbf16, #tpu.memory_space<vmem>>, %arg13: memref<1x32xf32, #tpu.memory_space<vmem>>, %arg14: memref<32x16xbf16, #tpu.memory_space<vmem>>, %arg15: memref<1x16xf32, #tpu.memory_space<vmem>>, %arg16: memref<16x128xbf16, #tpu.memory_space<vmem>>, %arg17: memref<1x128xf32, #tpu.memory_space<vmem>>, %arg18: memref<16x128xf32, #tpu.memory_space<vmem>>) attributes {dimension_semantics = [#tpu.dimension_semantics<parallel>], iteration_bounds = array<i64: 4>, scalar_prefetch = 0 : i64, scratch_operands = 0 : i64, tpu.core_type = #tpu.core_type<tc>, window_params = [{transform_indices = @transform_0, window_bounds = array<i64: 16, 64>}, {pipeline_mode = #tpu.pipeline_mode<synchronous>, transform_indices = @transform_1, window_bounds = array<i64: 64, 384>}, {pipeline_mode = #tpu.pipeline_mode<synchronous>, transform_indices = @transform_2, window_bounds = array<i64: 1, 384>}, {pipeline_mode = #tpu.pipeline_mode<synchronous>, transform_indices = @transform_3, window_bounds = array<i64: 384, 512>}, {pipeline_mode = #tpu.pipeline_mode<synchronous>, transform_indices = @transform_4, window_bounds = array<i64: 1, 512>}, {pipeline_mode = #tpu.pipeline_mode<synchronous>, transform_indices = @transform_5, window_bounds = array<i64: 512, 384>}, {pipeline_mode = #tpu.pipeline_mode<synchronous>, transform_indices = @transform_6, window_bounds = array<i64: 1, 384>}, {pipeline_mode = #tpu.pipeline_mode<synchronous>, transform_indices = @transform_7, window_bounds = array<i64: 384, 256>}, {pipeline_mode = #tpu.pipeline_mode<synchronous>, transform_indices = @transform_8, window_bounds = array<i64: 1, 256>}, {pipeline_mode = #tpu.pipeline_mode<synchronous>, transform_indices = @transform_9, window_bounds = array<i64: 256, 64>}, {pipeline_mode = #tpu.pipeline_mode<synchronous>, transform_indices = @transform_10, window_bounds = array<i64: 1, 64>}, {pipeline_mode = #tpu.pipeline_mode<synchronous>, transform_indices = @transform_11, window_bounds = array<i64: 64, 32>}, {pipeline_mode = #tpu.pipeline_mode<synchronous>, transform_indices = @transform_12, window_bounds = array<i64: 1, 32>}, {pipeline_mode = #tpu.pipeline_mode<synchronous>, transform_indices = @transform_13, window_bounds = array<i64: 32, 16>}, {pipeline_mode = #tpu.pipeline_mode<synchronous>, transform_indices = @transform_14, window_bounds = array<i64: 1, 16>}, {pipeline_mode = #tpu.pipeline_mode<synchronous>, transform_indices = @transform_15, window_bounds = array<i64: 16, 128>}, {pipeline_mode = #tpu.pipeline_mode<synchronous>, transform_indices = @transform_16, window_bounds = array<i64: 1, 128>}, {transform_indices = @transform_17, window_bounds = array<i64: 16, 128>}]} {
    %c0 = arith.constant 0 : index
    %c0_0 = arith.constant 0 : index
    %0 = vector.load %arg1[%c0, %c0_0] : memref<16x64xf32, #tpu.memory_space<vmem>>, vector<16x64xf32>
    %1 = arith.truncf %0 : vector<16x64xf32> to vector<16x64xbf16>
    %c0_1 = arith.constant 0 : index
    %c0_2 = arith.constant 0 : index
    %2 = vector.load %arg2[%c0_1, %c0_2] : memref<64x384xbf16, #tpu.memory_space<vmem>>, vector<64x384xbf16>
    %cst = arith.constant dense<0.000000e+00> : vector<16x384xf32>
    %3 = tpu.matmul %1, %2, %cst {dimension_numbers = #tpu.dot_dimension_numbers<[1], [0], [0], [1], [0, 0, 1, 1], [], []>} : vector<16x64xbf16>, vector<64x384xbf16>, vector<16x384xf32> -> vector<16x384xf32>
    %c0_3 = arith.constant 0 : index
    %c0_4 = arith.constant 0 : index
    %4 = vector.load %arg3[%c0_3, %c0_4] : memref<1x384xf32, #tpu.memory_space<vmem>>, vector<1x384xf32>
    %5 = vector.broadcast %4 : vector<1x384xf32> to vector<16x384xf32>
    %6 = arith.addf %3, %5 : vector<16x384xf32>
    %cst_5 = arith.constant 0.000000e+00 : f32
    %7 = vector.broadcast %cst_5 : f32 to vector<16x384xf32>
    %8 = arith.maximumf %6, %7 : vector<16x384xf32>
    %9 = arith.truncf %8 : vector<16x384xf32> to vector<16x384xbf16>
    %c0_6 = arith.constant 0 : index
    %c0_7 = arith.constant 0 : index
    %10 = vector.load %arg4[%c0_6, %c0_7] : memref<384x512xbf16, #tpu.memory_space<vmem>>, vector<384x512xbf16>
    %cst_8 = arith.constant dense<0.000000e+00> : vector<16x512xf32>
    %11 = tpu.matmul %9, %10, %cst_8 {dimension_numbers = #tpu.dot_dimension_numbers<[1], [0], [0], [1], [0, 0, 1, 1], [], []>} : vector<16x384xbf16>, vector<384x512xbf16>, vector<16x512xf32> -> vector<16x512xf32>
    %c0_9 = arith.constant 0 : index
    %c0_10 = arith.constant 0 : index
    %12 = vector.load %arg5[%c0_9, %c0_10] : memref<1x512xf32, #tpu.memory_space<vmem>>, vector<1x512xf32>
    %13 = vector.broadcast %12 : vector<1x512xf32> to vector<16x512xf32>
    %14 = arith.addf %11, %13 : vector<16x512xf32>
    %cst_11 = arith.constant 0.000000e+00 : f32
    %15 = vector.broadcast %cst_11 : f32 to vector<16x512xf32>
    %16 = arith.maximumf %14, %15 : vector<16x512xf32>
    %17 = arith.truncf %16 : vector<16x512xf32> to vector<16x512xbf16>
    %c0_12 = arith.constant 0 : index
    %c0_13 = arith.constant 0 : index
    %18 = vector.load %arg6[%c0_12, %c0_13] : memref<512x384xbf16, #tpu.memory_space<vmem>>, vector<512x384xbf16>
    %cst_14 = arith.constant dense<0.000000e+00> : vector<16x384xf32>
    %19 = tpu.matmul %17, %18, %cst_14 {dimension_numbers = #tpu.dot_dimension_numbers<[1], [0], [0], [1], [0, 0, 1, 1], [], []>} : vector<16x512xbf16>, vector<512x384xbf16>, vector<16x384xf32> -> vector<16x384xf32>
    %c0_15 = arith.constant 0 : index
    %c0_16 = arith.constant 0 : index
    %20 = vector.load %arg7[%c0_15, %c0_16] : memref<1x384xf32, #tpu.memory_space<vmem>>, vector<1x384xf32>
    %21 = vector.broadcast %20 : vector<1x384xf32> to vector<16x384xf32>
    %22 = arith.addf %19, %21 : vector<16x384xf32>
    %cst_17 = arith.constant 0.000000e+00 : f32
    %23 = vector.broadcast %cst_17 : f32 to vector<16x384xf32>
    %24 = arith.maximumf %22, %23 : vector<16x384xf32>
    %25 = arith.truncf %24 : vector<16x384xf32> to vector<16x384xbf16>
    %c0_18 = arith.constant 0 : index
    %c0_19 = arith.constant 0 : index
    %26 = vector.load %arg8[%c0_18, %c0_19] : memref<384x256xbf16, #tpu.memory_space<vmem>>, vector<384x256xbf16>
    %cst_20 = arith.constant dense<0.000000e+00> : vector<16x256xf32>
    %27 = tpu.matmul %25, %26, %cst_20 {dimension_numbers = #tpu.dot_dimension_numbers<[1], [0], [0], [1], [0, 0, 1, 1], [], []>} : vector<16x384xbf16>, vector<384x256xbf16>, vector<16x256xf32> -> vector<16x256xf32>
    %c0_21 = arith.constant 0 : index
    %c0_22 = arith.constant 0 : index
    %28 = vector.load %arg9[%c0_21, %c0_22] : memref<1x256xf32, #tpu.memory_space<vmem>>, vector<1x256xf32>
    %29 = vector.broadcast %28 : vector<1x256xf32> to vector<16x256xf32>
    %30 = arith.addf %27, %29 : vector<16x256xf32>
    %cst_23 = arith.constant 0.000000e+00 : f32
    %31 = vector.broadcast %cst_23 : f32 to vector<16x256xf32>
    %32 = arith.maximumf %30, %31 : vector<16x256xf32>
    %33 = arith.truncf %32 : vector<16x256xf32> to vector<16x256xbf16>
    %c0_24 = arith.constant 0 : index
    %c0_25 = arith.constant 0 : index
    %34 = vector.load %arg10[%c0_24, %c0_25] : memref<256x64xbf16, #tpu.memory_space<vmem>>, vector<256x64xbf16>
    %cst_26 = arith.constant dense<0.000000e+00> : vector<16x64xf32>
    %35 = tpu.matmul %33, %34, %cst_26 {dimension_numbers = #tpu.dot_dimension_numbers<[1], [0], [0], [1], [0, 0, 1, 1], [], []>} : vector<16x256xbf16>, vector<256x64xbf16>, vector<16x64xf32> -> vector<16x64xf32>
    %c0_27 = arith.constant 0 : index
    %c0_28 = arith.constant 0 : index
    %36 = vector.load %arg11[%c0_27, %c0_28] : memref<1x64xf32, #tpu.memory_space<vmem>>, vector<1x64xf32>
    %37 = vector.broadcast %36 : vector<1x64xf32> to vector<16x64xf32>
    %38 = arith.addf %35, %37 : vector<16x64xf32>
    %cst_29 = arith.constant 0.000000e+00 : f32
    %39 = vector.broadcast %cst_29 : f32 to vector<16x64xf32>
    %40 = arith.maximumf %38, %39 : vector<16x64xf32>
    %41 = arith.truncf %40 : vector<16x64xf32> to vector<16x64xbf16>
    %c0_30 = arith.constant 0 : index
    %c0_31 = arith.constant 0 : index
    %42 = vector.load %arg12[%c0_30, %c0_31] : memref<64x32xbf16, #tpu.memory_space<vmem>>, vector<64x32xbf16>
    %cst_32 = arith.constant dense<0.000000e+00> : vector<16x32xf32>
    %43 = tpu.matmul %41, %42, %cst_32 {dimension_numbers = #tpu.dot_dimension_numbers<[1], [0], [0], [1], [0, 0, 1, 1], [], []>} : vector<16x64xbf16>, vector<64x32xbf16>, vector<16x32xf32> -> vector<16x32xf32>
    %c0_33 = arith.constant 0 : index
    %c0_34 = arith.constant 0 : index
    %44 = vector.load %arg13[%c0_33, %c0_34] : memref<1x32xf32, #tpu.memory_space<vmem>>, vector<1x32xf32>
    %45 = vector.broadcast %44 : vector<1x32xf32> to vector<16x32xf32>
    %46 = arith.addf %43, %45 : vector<16x32xf32>
    %cst_35 = arith.constant 0.000000e+00 : f32
    %47 = vector.broadcast %cst_35 : f32 to vector<16x32xf32>
    %48 = arith.maximumf %46, %47 : vector<16x32xf32>
    %49 = arith.truncf %48 : vector<16x32xf32> to vector<16x32xbf16>
    %c0_36 = arith.constant 0 : index
    %c0_37 = arith.constant 0 : index
    %50 = vector.load %arg14[%c0_36, %c0_37] : memref<32x16xbf16, #tpu.memory_space<vmem>>, vector<32x16xbf16>
    %cst_38 = arith.constant dense<0.000000e+00> : vector<16x16xf32>
    %51 = tpu.matmul %49, %50, %cst_38 {dimension_numbers = #tpu.dot_dimension_numbers<[1], [0], [0], [1], [0, 0, 1, 1], [], []>} : vector<16x32xbf16>, vector<32x16xbf16>, vector<16x16xf32> -> vector<16x16xf32>
    %c0_39 = arith.constant 0 : index
    %c0_40 = arith.constant 0 : index
    %52 = vector.load %arg15[%c0_39, %c0_40] : memref<1x16xf32, #tpu.memory_space<vmem>>, vector<1x16xf32>
    %53 = vector.broadcast %52 : vector<1x16xf32> to vector<16x16xf32>
    %54 = arith.addf %51, %53 : vector<16x16xf32>
    %cst_41 = arith.constant 0.000000e+00 : f32
    %55 = vector.broadcast %cst_41 : f32 to vector<16x16xf32>
    %56 = arith.maximumf %54, %55 : vector<16x16xf32>
    %57 = arith.truncf %56 : vector<16x16xf32> to vector<16x16xbf16>
    %c0_42 = arith.constant 0 : index
    %c0_43 = arith.constant 0 : index
    %58 = vector.load %arg16[%c0_42, %c0_43] : memref<16x128xbf16, #tpu.memory_space<vmem>>, vector<16x128xbf16>
    %cst_44 = arith.constant dense<0.000000e+00> : vector<16x128xf32>
    %59 = tpu.matmul %57, %58, %cst_44 {dimension_numbers = #tpu.dot_dimension_numbers<[1], [0], [0], [1], [0, 0, 1, 1], [], []>} : vector<16x16xbf16>, vector<16x128xbf16>, vector<16x128xf32> -> vector<16x128xf32>
    %c0_45 = arith.constant 0 : index
    %c0_46 = arith.constant 0 : index
    %60 = vector.load %arg17[%c0_45, %c0_46] : memref<1x128xf32, #tpu.memory_space<vmem>>, vector<1x128xf32>
    %61 = vector.broadcast %60 : vector<1x128xf32> to vector<16x128xf32>
    %62 = arith.addf %59, %61 : vector<16x128xf32>
    %c0_47 = arith.constant 0 : index
    %c0_48 = arith.constant 0 : index
    %63 = vector.load %arg18[%c0_47, %c0_48] : memref<16x128xf32, #tpu.memory_space<vmem>>, vector<16x128xf32>
    tpu.vector_store %arg18[%c0_47, %c0_48], %62 {strides = array<i32>} : memref<16x128xf32, #tpu.memory_space<vmem>>, vector<16x128xf32>,
    return
  }
  func.func @transform_0(%arg0: i32) -> (i32, i32) {
    %c0_i32 = arith.constant 0 : i32
    %c0_i32_0 = arith.constant 0 : i32
    return %arg0, %c0_i32 : i32, i32
  }
  func.func @transform_1(%arg0: i32) -> (i32, i32) {
    %c0_i32 = arith.constant 0 : i32
    %c0_i32_0 = arith.constant 0 : i32
    %c0_i32_1 = arith.constant 0 : i32
    return %c0_i32, %c0_i32_0 : i32, i32
  }
  func.func @transform_2(%arg0: i32) -> (i32, i32) {
    %c0_i32 = arith.constant 0 : i32
    %c0_i32_0 = arith.constant 0 : i32
    %c0_i32_1 = arith.constant 0 : i32
    return %c0_i32, %c0_i32_0 : i32, i32
  }
  func.func @transform_3(%arg0: i32) -> (i32, i32) {
    %c0_i32 = arith.constant 0 : i32
    %c0_i32_0 = arith.constant 0 : i32
    %c0_i32_1 = arith.constant 0 : i32
    return %c0_i32, %c0_i32_0 : i32, i32
  }
  func.func @transform_4(%arg0: i32) -> (i32, i32) {
    %c0_i32 = arith.constant 0 : i32
    %c0_i32_0 = arith.constant 0 : i32
    %c0_i32_1 = arith.constant 0 : i32
    return %c0_i32, %c0_i32_0 : i32, i32
  }
  func.func @transform_5(%arg0: i32) -> (i32, i32) {
    %c0_i32 = arith.constant 0 : i32
    %c0_i32_0 = arith.constant 0 : i32
    %c0_i32_1 = arith.constant 0 : i32
    return %c0_i32, %c0_i32_0 : i32, i32
  }
  func.func @transform_6(%arg0: i32) -> (i32, i32) {
    %c0_i32 = arith.constant 0 : i32
    %c0_i32_0 = arith.constant 0 : i32
    %c0_i32_1 = arith.constant 0 : i32
    return %c0_i32, %c0_i32_0 : i32, i32
  }
  func.func @transform_7(%arg0: i32) -> (i32, i32) {
    %c0_i32 = arith.constant 0 : i32
    %c0_i32_0 = arith.constant 0 : i32
    %c0_i32_1 = arith.constant 0 : i32
    return %c0_i32, %c0_i32_0 : i32, i32
  }
  func.func @transform_8(%arg0: i32) -> (i32, i32) {
    %c0_i32 = arith.constant 0 : i32
    %c0_i32_0 = arith.constant 0 : i32
    %c0_i32_1 = arith.constant 0 : i32
    return %c0_i32, %c0_i32_0 : i32, i32
  }
  func.func @transform_9(%arg0: i32) -> (i32, i32) {
    %c0_i32 = arith.constant 0 : i32
    %c0_i32_0 = arith.constant 0 : i32
    %c0_i32_1 = arith.constant 0 : i32
    return %c0_i32, %c0_i32_0 : i32, i32
  }
  func.func @transform_10(%arg0: i32) -> (i32, i32) {
    %c0_i32 = arith.constant 0 : i32
    %c0_i32_0 = arith.constant 0 : i32
    %c0_i32_1 = arith.constant 0 : i32
    return %c0_i32, %c0_i32_0 : i32, i32
  }
  func.func @transform_11(%arg0: i32) -> (i32, i32) {
    %c0_i32 = arith.constant 0 : i32
    %c0_i32_0 = arith.constant 0 : i32
    %c0_i32_1 = arith.constant 0 : i32
    return %c0_i32, %c0_i32_0 : i32, i32
  }
  func.func @transform_12(%arg0: i32) -> (i32, i32) {
    %c0_i32 = arith.constant 0 : i32
    %c0_i32_0 = arith.constant 0 : i32
    %c0_i32_1 = arith.constant 0 : i32
    return %c0_i32, %c0_i32_0 : i32, i32
  }
  func.func @transform_13(%arg0: i32) -> (i32, i32) {
    %c0_i32 = arith.constant 0 : i32
    %c0_i32_0 = arith.constant 0 : i32
    %c0_i32_1 = arith.constant 0 : i32
    return %c0_i32, %c0_i32_0 : i32, i32
  }
  func.func @transform_14(%arg0: i32) -> (i32, i32) {
    %c0_i32 = arith.constant 0 : i32
    %c0_i32_0 = arith.constant 0 : i32
    %c0_i32_1 = arith.constant 0 : i32
    return %c0_i32, %c0_i32_0 : i32, i32
  }
  func.func @transform_15(%arg0: i32) -> (i32, i32) {
    %c0_i32 = arith.constant 0 : i32
    %c0_i32_0 = arith.constant 0 : i32
    %c0_i32_1 = arith.constant 0 : i32
    return %c0_i32, %c0_i32_0 : i32, i32
  }
  func.func @transform_16(%arg0: i32) -> (i32, i32) {
    %c0_i32 = arith.constant 0 : i32
    %c0_i32_0 = arith.constant 0 : i32
    %c0_i32_1 = arith.constant 0 : i32
    return %c0_i32, %c0_i32_0 : i32, i32
  }
  func.func @transform_17(%arg0: i32) -> (i32, i32) {
    %c0_i32 = arith.constant 0 : i32
    %c0_i32_0 = arith.constant 0 : i32
    return %arg0, %c0_i32 : i32, i32
  }
}

</mosaic_0001>

<bundles_post_ra>
// kernel: stmnet_forward.1
= control target key start
LH: loop header
LB: loop body
LE: loop exit
PB: predicated region body
PF: predicated region fallthrough
CT: control target
= control target key end

     0   :  { %s5076_s0 = inlined_call_operand.vmem [shape: f32[64,64], index: 0, kind: input, shape index: {}]   ;;  %s5077_s1 = inlined_call_operand.hbm [shape: bf16[64,384], index: 1, kind: input, shape index: {}]   ;;  %s5078_s2 = inlined_call_operand.vmem [shape: f32[1,384], index: 2, kind: input, shape index: {}]   ;;  %s5079_s3 = inlined_call_operand.hbm [shape: bf16[384,512], index: 3, kind: input, shape index: {}]   ;;  %s5080_s4 = inlined_call_operand.hbm [shape: f32[1,512], index: 4, kind: input, shape index: {}]   ;;  %s5081_s5 = inlined_call_operand.hbm [shape: bf16[512,384], index: 5, kind: input, shape index: {}]   ;;  %s5082_s6 = inlined_call_operand.vmem [shape: f32[1,384], index: 6, kind: input, shape index: {}]   ;;  %s5083_s7 = inlined_call_operand.vmem [shape: bf16[384,256], index: 7, kind: input, shape index: {}]   ;;  %s5084_s8 = inlined_call_operand.vmem [shape: f32[1,256], index: 8, kind: input, shape index: {}]   ;;  %s5085_s9 = inlined_call_operand.vmem [shape: bf16[256,64], index: 9, kind: input, shape index: {}]   ;;  %s5086_s10 = inlined_call_operand.hbm [shape: f32[1,64], index: 10, kind: input, shape index: {}]   ;;  %s5087_s11 = inlined_call_operand.vmem [shape: bf16[64,32], index: 11, kind: input, shape index: {}]   ;;  %s5088_s12 = inlined_call_operand.hbm [shape: f32[1,32], index: 12, kind: input, shape index: {}]   ;;  %s5089_s13 = inlined_call_operand.vmem [shape: bf16[32,16], index: 13, kind: input, shape index: {}]   ;;  %s5090_s14 = inlined_call_operand.hbm [shape: f32[1,16], index: 14, kind: input, shape index: {}]   ;;  %s5091_s15 = inlined_call_operand.vmem [shape: bf16[16,128], index: 15, kind: input, shape index: {}]   ;;  %s5092_s16 = inlined_call_operand.hbm [shape: f32[1,128], index: 16, kind: input, shape index: {}]   ;;  %s5093_s17 = inlined_call_operand.vmem [shape: f32[64,128], index: 17, kind: output, shape index: {}]  }
   0x1   :  { %5100 = sst [smem:[#allocation20_spill]] %s5076_s0 }
   0x2   :  { %5101 = sst [smem:[#allocation21_spill]] %s5077_s1 }
   0x3   :  { %22 = vsyncpa [#allocation3], 0 }
   0x4   :  { %23 = vsyncpa [#allocation5], 0 }
   0x5   :  { %24 = vsyncpa [#allocation8], 0 }
   0x6   :  { %25 = vsyncpa [#allocation11], 0 }
   0x7   :  { %26 = vsyncpa [#allocation14], 0  ;;  %s4648_s24 = smov 0  }
   0x8 LB: > { %s4543_s25 = smov [#allocation4]   ;;  %s5094_s27 = sadd.s32 4294967295, %s4541_s24   ;;  %s4541_s24 = sphi %s4648_s24, %s32_s24  }
   0x9   : > { %s453_s26 = sshll.u32 %s4543_s25, 4  ;;  %p3400_p0 = scmp.ge.s32.totalorder %s4541_s24, 1  ;;  %s454_s26 = int_to_ptr.vmem [resolvable:$true] %s453_s26 }
   0xa   : > { %p425_p1 = scmp.lt.s32.totalorder %s4541_s24, 5  ;;  %p4658_p2 = scmp.eq.s32.totalorder %s5094_s27, 0 }
   0xb   : > { %s4544_s30 = smov [#allocation7]   ;;  %s4545_s19 = smov [#allocation10]  }
   0xc   : > { %s5102_s28 = scalar_select %p4658_p2, 1, 0 }
   0xd   : > { %p4662_p3 = pnand %p3400_p0, %p425_p1  ;;  %s477_s18 = sshll.u32 %s4544_s30, 4  ;;  %s4674_s18 = int_to_ptr.vmem [resolvable:$true] %s477_s18 }
   0xe   : > { %s517_s1 = sshll.u32 %s4545_s19, 4  ;;  %s4318_s21 = scalar_lea.vmem %s454_s26, 12288  ;;  %s4676_s1 = int_to_ptr.vmem [resolvable:$true] %s517_s1 }
   0xf   : > { %s5103_s29 = scalar_select %p4662_p3, 1, 0 }
  0x10   : > { %p3860_p4 = pneg %p4662_p3  ;;  %p4319_p7 = scmp.ne.s32.totalorder %s454_s26, %s4318_s21 }
  0x11   : > { %p4326_p10 = scmp.lt.s32.totalorder %s454_s26, %s454_s26  ;;  %p4327_p11 = scmp.lt.s32.totalorder %s4318_s21, %s4318_s21 }
  0x12   : > { %p4670_p5 = pnand %p4658_p2, %p3860_p4 }
  0x13   : > { %p4328_p12 = por %p4327_p11, %p4326_p10 }
  0x14   : > { %p4680_p6 = pneg %p4670_p5 }
  0x16   : > { %p4321_p8 = pnand %p4319_p7, %p4680_p6 }
  0x18   : > { %p4322_p9 = pneg %p4321_p8 }
  0x1a   : > { %p4329_p13 = pnand %p4328_p12, %p4322_p9 }
  0x1c   : > { %4332 = shalt.err (!%p4329_p13)
}
  0x1d   : > { %s4546_s22 = smov 256   ;;  %s4547_s23 = smov 16  }
  0x1e   : > { %3866 = dma.hbm_to_vmem [thread:$0]  (!%p4670_p5), %s5079_s3, 12288, %s454_s26, [#allocation5], %s4546_s22, %s4546_s22, %s4547_s23  }
  0x1f   : > { %s4344_s19 = scalar_lea.vmem %s4674_s18, 12288  ;;  %p4352_p7 = scmp.lt.s32.totalorder %s4674_s18, %s4674_s18 }
  0x20   : > { %p4345_p0 = scmp.ne.s32.totalorder %s4674_s18, %s4344_s19  ;;  %p4353_p8 = scmp.lt.s32.totalorder %s4344_s19, %s4344_s19 }
  0x22   : > { %p4347_p1 = pnand %p4345_p0, %p4680_p6  ;;  %p4354_p9 = por %p4353_p8, %p4352_p7 }
  0x24   : > { %p4348_p4 = pneg %p4347_p1 }
  0x26   : > { %p4355_p10 = pnand %p4354_p9, %p4348_p4 }
  0x28   : > { %4358 = shalt.err (!%p4355_p10)
}
  0x29   : > { %s5095_s21 = smov 192   ;;  %s5096_s26 = smov 12  }
  0x2a   : > { %3872 = dma.hbm_to_vmem [thread:$0]  (!%p4670_p5), %s5081_s5, 12288, %s4674_s18, [#allocation8], %s5095_s21, %s5095_s21, %s5096_s26  }
  0x2b   : > { %s4370_s25 = scalar_lea.vmem %s4676_s1, 16  ;;  %s4377_s30 = scalar_lea.vmem %s4676_s1, 32 }
  0x2c   : > { %p4371_p11 = scmp.ne.s32.totalorder %s4676_s1, %s4370_s25  ;;  %p4378_p0 = scmp.lt.s32.totalorder %s4676_s1, %s4676_s1 }
  0x2d   : > { %p4379_p1 = scmp.lt.s32.totalorder %s4377_s30, %s4370_s25 }
  0x2e   : > { %p4373_p12 = pnand %p4371_p11, %p4680_p6 }
  0x2f   : > { %p4380_p4 = por %p4379_p1, %p4378_p0 }
  0x30   : > { %p4374_p13 = pneg %p4373_p12 }
  0x32   : > { %p4381_p7 = pnand %p4380_p4, %p4374_p13 }
  0x34   : > { %4384 = shalt.err (!%p4381_p7)
}
  0x35   : > { %3878 = dma.hbm_to_vmem [thread:$0]  (!%p4670_p5), %s5088_s12, 16, %s4676_s1, [#allocation11]  }
  0x36   : > { %s4550_s18 = smov [#allocation2]   ;;  %s4551_s23 = smov [#allocation6]  }
  0x37   : > { %s437_s22 = sshll.u32 %s4550_s18, 4  ;;  %s467_s21 = sshll.u32 %s4551_s23, 4  ;;  %s438_s22 = int_to_ptr.vmem [resolvable:$true] %s437_s22  ;;  %s468_s21 = int_to_ptr.vmem [resolvable:$true] %s467_s21 }
  0x38   : > { %s4396_s26 = scalar_lea.vmem %s438_s22, 1536  ;;  %p4404_p11 = scmp.lt.s32.totalorder %s438_s22, %s438_s22 }
  0x39   : > { %p4397_p8 = scmp.ne.s32.totalorder %s438_s22, %s4396_s26  ;;  %p4405_p12 = scmp.lt.s32.totalorder %s4396_s26, %s4396_s26 }
  0x3b   : > { %p4399_p9 = pnand %p4397_p8, %p4680_p6  ;;  %p4406_p13 = por %p4405_p12, %p4404_p11 }
  0x3d   : > { %p4400_p10 = pneg %p4399_p9 }
  0x3f   : > { %p4407_p0 = pnand %p4406_p13, %p4400_p10 }
  0x41   : > { %4410 = shalt.err (!%p4407_p0)
}
  0x42   : > { %s5106_s27 = smov 12   ;;  %s5107_s1 = smov 192  }
  0x43   : > { %s5108_s19 = sld [smem:[#allocation21_spill]]  ;;  %s4422_s18 = scalar_lea.vmem %s468_s21, 64 }
  0x44   : > { %p4423_p1 = scmp.ne.s32.totalorder %s468_s21, %s4422_s18  ;;  %p4430_p8 = scmp.lt.s32.totalorder %s468_s21, %s468_s21 }
  0x45   : > { %p4431_p9 = scmp.lt.s32.totalorder %s4422_s18, %s4422_s18 }
  0x46   : > { %p4425_p4 = pnand %p4423_p1, %p4680_p6 }
  0x47   : > { %p4432_p11 = por %p4431_p9, %p4430_p8 }
  0x48   : > { %p4426_p7 = pneg %p4425_p4 }
  0x49   : > { %3863 = dma.hbm_to_vmem [thread:$0]  (!%p4670_p5), %s5108_s19, 1536, %s438_s22, [#allocation3], %s5107_s1, %s5107_s1, %s5106_s27  }
  0x4a   : > { %p4433_p10 = pnand %p4432_p11, %p4426_p7 }
  0x4c   : > { %4436 = shalt.err (!%p4433_p10)
}
  0x4d   : > { %3869 = dma.hbm_to_vmem [thread:$0]  (!%p4670_p5), %s5080_s4, 64, %s468_s21, [#allocation5]  }
  0x4e   : > { %s4552_s25 = smov [#allocation9]   ;;  %s4553_s22 = smov [#allocation12]  }
  0x4f   : > { %s503_s30 = sshll.u32 %s4552_s25, 4  ;;  %s531_s27 = sshll.u32 %s4553_s22, 4  ;;  %s504_s30 = int_to_ptr.vmem [resolvable:$true] %s503_s30  ;;  %s532_s27 = int_to_ptr.vmem [resolvable:$true] %s531_s27 }
  0x50   : > { %s4448_s1 = scalar_lea.vmem %s504_s30, 16  ;;  %s4455_s19 = scalar_lea.vmem %s504_s30, 32 }
  0x51   : > { %p4449_p12 = scmp.ne.s32.totalorder %s504_s30, %s4448_s1  ;;  %p4456_p1 = scmp.lt.s32.totalorder %s504_s30, %s504_s30 }
  0x52   : > { %p4457_p4 = scmp.lt.s32.totalorder %s4455_s19, %s4448_s1 }
  0x53   : > { %p4451_p13 = pnand %p4449_p12, %p4680_p6 }
  0x54   : > { %p4458_p7 = por %p4457_p4, %p4456_p1 }
  0x55   : > { %p4452_p0 = pneg %p4451_p13 }
  0x57   : > { %p4459_p8 = pnand %p4458_p7, %p4452_p0 }
  0x59   : > { %4462 = shalt.err (!%p4459_p8)
}
  0x5a   : > { %3875 = dma.hbm_to_vmem [thread:$0]  (!%p4670_p5), %s5086_s10, 16, %s504_s30, [#allocation8]  }
  0x5b   : > { %s4474_s26 = scalar_lea.vmem %s532_s27, 16  ;;  %s4481_s23 = scalar_lea.vmem %s532_s27, 32 }
  0x5c   : > { %p4475_p9 = scmp.ne.s32.totalorder %s532_s27, %s4474_s26  ;;  %p4482_p12 = scmp.lt.s32.totalorder %s532_s27, %s532_s27 }
  0x5d   : > { %p4483_p13 = scmp.lt.s32.totalorder %s4481_s23, %s4474_s26 }
  0x5e   : > { %p4477_p11 = pnand %p4475_p9, %p4680_p6 }
  0x5f   : > { %p4484_p2 = por %p4483_p13, %p4482_p12 }
  0x60   : > { %p4478_p10 = pneg %p4477_p11 }
  0x62   : > { %p4485_p3 = pnand %p4484_p2, %p4478_p10 }
  0x64   : > { %4488 = shalt.err (!%p4485_p3)
}
  0x65   : > { %3881 = dma.hbm_to_vmem [thread:$0]  (!%p4670_p5), %s5090_s14, 16, %s532_s27, [#allocation11]  }
  0x66   : > { %s4554_s1 = smov [#allocation13]  }
  0x67   : > { %s545_s30 = sshll.u32 %s4554_s1, 4  ;;  %s546_s30 = int_to_ptr.vmem [resolvable:$true] %s545_s30 }
  0x68   : > { %s4500_s19 = scalar_lea.vmem %s546_s30, 16  ;;  %s4507_s21 = scalar_lea.vmem %s546_s30, 32 }
  0x69   : > { %p4501_p0 = scmp.ne.s32.totalorder %s546_s30, %s4500_s19  ;;  %p4508_p7 = scmp.lt.s32.totalorder %s546_s30, %s546_s30 }
  0x6a   : > { %p4509_p8 = scmp.lt.s32.totalorder %s4507_s21, %s4500_s19 }
  0x6b   : > { %p4503_p1 = pnand %p4501_p0, %p4680_p6 }
  0x6c   : > { %p4510_p2 = por %p4509_p8, %p4508_p7 }
  0x6d   : > { %p4504_p4 = pneg %p4503_p1 }
  0x6f   : > { %p4511_p3 = pnand %p4510_p2, %p4504_p4 }
  0x71   : > { %4514 = shalt.err (!%p4511_p3)
}
  0x72   : > { %3884 = dma.hbm_to_vmem [thread:$0]  (!%p4670_p5), %s5092_s16, 16, %s546_s30, [#allocation14]  }
  0x73   : > { %p5109_p9 = scmp.ne.s32.totalorder %s5103_s29, 0 }
  0x74   : > { %p5110_p11 = scmp.ne.s32.totalorder (!%p5109_p9), %s5102_s28, 0 }
  0x75   : > { %567 = sbr.rel (%p5109_p9) target bundleno = 1882 (0x75a), region = 88 }
  0x7a   : > { %4520 = dma.done.wait (%p5110_p11), [#allocation3], 1536  }
  0x7b   : > { %4522 = vsyncadd (%p5110_p11), [#allocation3], 4294965760 }
  0x7c   : > { %4524 = dma.done.wait (%p5110_p11), [#allocation5], 12352  }
  0x7d   : > { %4526 = vsyncadd (%p5110_p11), [#allocation5], 4294954944 }
  0x7e   : > { %4528 = dma.done.wait (%p5110_p11), [#allocation8], 12304  }
  0x7f   : > { %4530 = vsyncadd (%p5110_p11), [#allocation8], 4294954992 }
  0x80   : > { %4532 = dma.done.wait (%p5110_p11), [#allocation11], 32  }
  0x81   : > { %4534 = vsyncadd (%p5110_p11), [#allocation11], 4294967264 }
  0x82   : > { %4536 = dma.done.wait (%p5110_p11), [#allocation14], 16  }
  0x83   : > { %4538 = vsyncadd (%p5110_p11), [#allocation14], 4294967280  ;;  %s5111_s29 = sadd.s32 4294967295, %s4541_s24   ;;  %v4555_v0 = vmov 0.0   ;;  %vm4556_vm0 = vmmov 0   ;;  %v4557_v1 = vmov 0  }
  0x84   : > { %s3419_s0 = sshll.u32 %s5111_s29, 1  ;;  %3790 = vmatprep.subr.bf16.mxu1 %v4555_v0  ;;  %3798 = vmatprep.mubr.msk.bf16.mxu1 %vm4556_vm0, %v4555_v0  ;;  %v3924_v2 = vld [vmem:[#allocation2 + $0x4c] ss:$12 sps:$4 sm:$0xff]   ;;  %v3926_v3 = vld [vmem:[#allocation2 + $0x50] ss:$12 sps:$4 sm:$0xff]   ;;  %s5112_s23 = sld [smem:[#allocation20_spill]] }
  0x85   : > { %796 = vmatprep.mubr.bf16.mxu0 %v4557_v1  ;;  %p648_p5 = scmp.lt.s32.totalorder %s3419_s0, 7  ;;  %772 = vmatprep.subr.bf16.mxu0 %v3924_v2  ;;  %v3927_v4 = vld [vmem:[#allocation2 + $0x48] ss:$12 sps:$4 sm:$0xff]   ;;  %v3930_v6 = vld [vmem:[#allocation2 + $0x38] ss:$12 sps:$4 sm:$0xff]   ;;  %vm760_vm1 = vcmask 523264  }
  0x86   : > { %3791 = vmatpush3.bf16.msra.mxu1 %v3926_v3  ;;  %v3928_v5 = vld [vmem:[#allocation2 + $0x34] ss:$12 sps:$4 sm:$0xff]   ;;  %773 = vmatpush1.bf16.msra.mxu0 %v3927_v4  ;;  %v3931_v7 = vld [vmem:[#allocation2 + $0x30] ss:$12 sps:$4 sm:$0xff]   ;;  %v3935_v10 = vld [vmem:[#allocation2 + $0x18] ss:$12 sps:$4 sm:$0xff]  }
  0x87   : > { %s5114_s0 = smov (!%p648_p5, %s3419_s0), 7  ;;  %3792 = vmatprep.subr.bf16.mxu1 %v4555_v0  ;;  %774 = vmatprep.subr.bf16.mxu0 %v3928_v5  ;;  %v3932_v8 = vld [vmem:[#allocation2 + $0x1c] ss:$12 sps:$4 sm:$0xff]   ;;  %v3934_v9 = vld [vmem:[#allocation2 + $0x20] ss:$12 sps:$4 sm:$0xff]   ;;  %v681_v5 = vlaneseq  ;;  %vm3153_vm2 = vcmask 261120  }
  0x88   : > { %s3420_s28 = sshll.u32 %s5114_s0, 3  ;;  %v3936_v11 = vld [vmem:[#allocation2 + $0x4] ss:$12 sps:$4 sm:$0xff]   ;;  %v3938_v12 = vld [vmem:[#allocation2 + $0x8] ss:$12 sps:$4 sm:$0xff]   ;;  %vm3216_vm3 = vcmask 130048  }
  0x89   : > { %v3939_v15 = vld [vmem:[#allocation2] ss:$12 sps:$4 sm:$0xff]   ;;  %v3942_v16 = vld [vmem:[#allocation4 + $0xe4] ss:$16 sps:$4 sm:$0xff]   ;;  %s657_s26 = scalar_lea.vmem %s5093_s17, %s3420_s28 }
  0x8a   : > { %3793 = vmatpush3.bf16.msra.mxu1 %v3930_v6  ;;  %s651_s25 = scalar_lea.vmem %s5112_s23, %s3420_s28  ;;  %775 = vmatpush1.bf16.msra.mxu0 %v3931_v7  ;;  %v3940_v18 = vld [vmem:[#allocation4 + $0xe0] ss:$16 sps:$4 sm:$0xff]   ;;  %v3945_v19 = vld [vmem:[#allocation4 + $0xc4] ss:$16 sps:$4 sm:$0xff]   ;;  %v4014_v2 = vld [vmem:[#allocation4 + $0xec] ss:$16 sps:$4 sm:$0xff]  }
  0x8b   : > { %3794 = vmatprep.subr.bf16.mxu1 %v4555_v0  ;;  %776 = vmatprep.subr.bf16.mxu0 %v3932_v8  ;;  %v660_v13 = vld [vmem:[%s651_s25] sm:$0xff]  ;;  %v661_v14 = vld [vmem:[%s651_s25 + $0x8] sm:$0xff]  ;;  %v4799_v6 = vshrl.u32 %v681_v5, 7 }
  0x8c   : > { %v662_v17 = vpack.c.bf16 %v661_v14, %v660_v13  ;;  %v3943_v20 = vld [vmem:[#allocation4 + $0xc0] ss:$16 sps:$4 sm:$0xff]   ;;  %v3948_v21 = vld [vmem:[#allocation4 + $0xa4] ss:$16 sps:$4 sm:$0xff]   ;;  %v4020_v4 = vld [vmem:[#allocation4 + $0x2ec] ss:$16 sps:$4 sm:$0xff]  }
  0x8d   : > { %v3964_v22 = vld [vmem:[#allocation4 + $0x2e0] ss:$16 sps:$4 sm:$0xff]   ;;  %v3966_v23 = vld [vmem:[#allocation4 + $0x2e4] ss:$16 sps:$4 sm:$0xff]   ;;  %v4802_v7 = vsub.s32 2, %v4799_v6  ;;  %v4805_v8 = vsub.s32 0, %v4799_v6 }
  0x8e   : > { %3795 = vmatpush3.bf16.msra.mxu1 %v3934_v9  ;;  %777 = vmatpush1.bf16.msra.mxu0 %v3935_v10  ;;  %v3946_v24 = vld [vmem:[#allocation4 + $0xa0] ss:$16 sps:$4 sm:$0xff]   ;;  %v3972_v26 = vld [vmem:[#allocation4 + $0x2c4] ss:$16 sps:$4 sm:$0xff]   ;;  %v4811_v10 = vsub.s32 1, %v4799_v6 }
  0x8f   : > { %3796 = vmatprep.subr.bf16.mxu1 %v4555_v0  ;;  %778 = vmatprep.subr.bf16.mxu0 %v3936_v11  ;;  %v3970_v25 = vld [vmem:[#allocation4 + $0x2c0] ss:$16 sps:$4 sm:$0xff]   ;;  %v3951_v27 = vld [vmem:[#allocation4 + $0x84] ss:$16 sps:$4 sm:$0xff]   ;;  %v4057_v5 = vld [vmem:[#allocation4 + $0x1e8] ss:$16 sps:$4 sm:$0xff]  }
  0x90   : > { %v3978_v28 = vld [vmem:[#allocation4 + $0x2a4] ss:$16 sps:$4 sm:$0xff]   ;;  %v3949_v29 = vld [vmem:[#allocation4 + $0x80] ss:$16 sps:$4 sm:$0xff]  }
  0x91   : > { %v3976_v30 = vld [vmem:[#allocation4 + $0x2a0] ss:$16 sps:$4 sm:$0xff]   ;;  %v3954_v31 = vld [vmem:[#allocation4 + $0x64] ss:$16 sps:$4 sm:$0xff]  }
  0x92   : > { %3797 = vmatpush3.bf16.msra.mxu1 %v3938_v12  ;;  %779 = vmatpush1.bf16.msra.mxu0 %v3939_v15  ;;  %v3984_v32 = vld [vmem:[#allocation4 + $0x284] ss:$16 sps:$4 sm:$0xff]   ;;  %v3952_v33 = vld [vmem:[#allocation4 + $0x60] ss:$16 sps:$4 sm:$0xff]  }
  0x93   : > { %1455 = vmatprep.subr.bf16.mxu0 %v3942_v16  ;;  %1498 = vmatprep.subr.bf16.mxu1 %v3966_v23  ;;  %v3982_v34 = vld [vmem:[#allocation4 + $0x280] ss:$16 sps:$4 sm:$0xff]   ;;  %v3957_v35 = vld [vmem:[#allocation4 + $0x44] ss:$16 sps:$4 sm:$0xff]  }
  0x94   : > { %v3990_v36 = vld [vmem:[#allocation4 + $0x264] ss:$16 sps:$4 sm:$0xff]   ;;  %v3955_v37 = vld [vmem:[#allocation4 + $0x40] ss:$16 sps:$4 sm:$0xff]  }
  0x95   : > { %3799 = vmatmul.mubr.msk.bf16.vlgmr.msra.gmra.mxu1 %vm760_vm1, %v662_v17  ;;  %3435 = vmatmul.mubr.msk.bf16.vlgmr.msra.gmra.mxu0 %vm760_vm1, %v662_v17  ;;  %v3960_v38 = vld [vmem:[#allocation4 + $0x24] ss:$16 sps:$4 sm:$0xff]   ;;  %v3988_v39 = vld [vmem:[#allocation4 + $0x260] ss:$16 sps:$4 sm:$0xff]  }
  0x96   : > { %1530 = vmatprep.mubr.bf16.mxu1 %v4557_v1  ;;  %1456 = vmatpush1.bf16.msra.mxu0 %v3940_v18  ;;  %v3996_v40 = vld [vmem:[#allocation4 + $0x244] ss:$16 sps:$4 sm:$0xff]   ;;  %v3958_v41 = vld [vmem:[#allocation4 + $0x20] ss:$16 sps:$4 sm:$0xff]  }
  0x97   : > { %1457 = vmatprep.subr.bf16.mxu0 %v3945_v19  ;;  %1499 = vmatpush1.bf16.msra.mxu1 %v3964_v22  ;;  %v3994_v42 = vld [vmem:[#allocation4 + $0x240] ss:$16 sps:$4 sm:$0xff]   ;;  %v3963_v43 = vld [vmem:[#allocation4 + $0x4] ss:$16 sps:$4 sm:$0xff]  }
  0x98   : > { %1500 = vmatprep.subr.bf16.mxu1 %v3972_v26  ;;  %v3961_v44 = vld [vmem:[#allocation4] ss:$16 sps:$4 sm:$0xff]   ;;  %v3969_v45 = vld [vmem:[#allocation4 + $0x1e4] ss:$16 sps:$4 sm:$0xff]  }
  0x99   : > { %v3967_v46 = vld [vmem:[#allocation4 + $0x1e0] ss:$16 sps:$4 sm:$0xff]   ;;  %v3975_v47 = vld [vmem:[#allocation4 + $0x1c4] ss:$16 sps:$4 sm:$0xff]  }
  0x9a   : > { %1458 = vmatpush1.bf16.msra.mxu0 %v3943_v20  ;;  %v3973_v48 = vld [vmem:[#allocation4 + $0x1c0] ss:$16 sps:$4 sm:$0xff]   ;;  %v3981_v49 = vld [vmem:[#allocation4 + $0x1a4] ss:$16 sps:$4 sm:$0xff]  }
  0x9b   : > { %1459 = vmatprep.subr.bf16.mxu0 %v3948_v21  ;;  %1501 = vmatpush1.bf16.msra.mxu1 %v3970_v25  ;;  %v3979_v50 = vld [vmem:[#allocation4 + $0x1a0] ss:$16 sps:$4 sm:$0xff]   ;;  %v3987_v51 = vld [vmem:[#allocation4 + $0x184] ss:$16 sps:$4 sm:$0xff]  }
  0x9c   : > { %1502 = vmatprep.subr.bf16.mxu1 %v3978_v28  ;;  %v3985_v52 = vld [vmem:[#allocation4 + $0x180] ss:$16 sps:$4 sm:$0xff]   ;;  %v3993_v53 = vld [vmem:[#allocation4 + $0x164] ss:$16 sps:$4 sm:$0xff]  }
  0x9d   : > { %v3991_v54 = vld [vmem:[#allocation4 + $0x160] ss:$16 sps:$4 sm:$0xff]   ;;  %v3999_v55 = vld [vmem:[#allocation4 + $0x144] ss:$16 sps:$4 sm:$0xff]  }
  0x9e   : > { %1460 = vmatpush1.bf16.msra.mxu0 %v3946_v24  ;;  %v4002_v56 = vld [vmem:[#allocation4 + $0x224] ss:$16 sps:$4 sm:$0xff]   ;;  %v3997_v57 = vld [vmem:[#allocation4 + $0x140] ss:$16 sps:$4 sm:$0xff]  }
  0x9f   : > { %1461 = vmatprep.subr.bf16.mxu0 %v3951_v27  ;;  %1503 = vmatpush1.bf16.msra.mxu1 %v3976_v30  ;;  %v4000_v58 = vld [vmem:[#allocation4 + $0x220] ss:$16 sps:$4 sm:$0xff]   ;;  %v4005_v59 = vld [vmem:[#allocation4 + $0x124] ss:$16 sps:$4 sm:$0xff]  }
  0xa0   : > { %1504 = vmatprep.subr.bf16.mxu1 %v3984_v32  ;;  %v4008_v60 = vld [vmem:[#allocation4 + $0x204] ss:$16 sps:$4 sm:$0xff]   ;;  %v4003_v61 = vld [vmem:[#allocation4 + $0x120] ss:$16 sps:$4 sm:$0xff]  }
  0xa1   : > { %v4006_v62 = vld [vmem:[#allocation4 + $0x200] ss:$16 sps:$4 sm:$0xff]   ;;  %v4011_v63 = vld [vmem:[#allocation4 + $0x104] ss:$16 sps:$4 sm:$0xff]  }
  0xa2   : > { %1462 = vmatpush1.bf16.msra.mxu0 %v3949_v29  ;;  %v4009_v3 = vld [vmem:[#allocation4 + $0x100] ss:$16 sps:$4 sm:$0xff]  }
  0xa3   : > { %1463 = vmatprep.subr.bf16.mxu0 %v3954_v31  ;;  %1505 = vmatpush1.bf16.msra.mxu1 %v3982_v34  ;;  %v679_v9 = vld [vmem:[%s5078_s2] sm:$0x7] }
  0xa4   : > { %1506 = vmatprep.subr.bf16.mxu1 %v3990_v36  ;;  %v692_v11 = vrot.slane %v679_v9, %v4802_v7  ;;  %v684_v12 = vrot.slane %v679_v9, %v4805_v8  ;;  %v688_v14 = vrot.slane %v679_v9, %v4811_v10  ;;  %v4060_v9 = vld [vmem:[#allocation4 + $0x208] ss:$16 sps:$4 sm:$0xff]  }
  0xa6   : > { %1464 = vmatpush1.bf16.msra.mxu0 %v3952_v33  ;;  %v4012_v33 = vld [vmem:[#allocation4 + $0xe8] ss:$16 sps:$4 sm:$0xff]  }
  0xa7   : > { %1465 = vmatprep.subr.bf16.mxu0 %v3957_v35  ;;  %1507 = vmatpush1.bf16.msra.mxu1 %v3988_v39  ;;  %v4017_v35 = vld [vmem:[#allocation4 + $0xcc] ss:$16 sps:$4 sm:$0xff]   ;;  %v4015_v39 = vld [vmem:[#allocation4 + $0xc8] ss:$16 sps:$4 sm:$0xff]  }
  0xa8   : > { %1508 = vmatprep.subr.bf16.mxu1 %v3996_v40  ;;  %v4018_v40 = vld [vmem:[#allocation4 + $0x2e8] ss:$16 sps:$4 sm:$0xff]  }
  0xaa   : > { %1466 = vmatpush1.bf16.msra.mxu0 %v3955_v37 }
  0xab   : > { %1467 = vmatprep.subr.bf16.mxu0 %v3960_v38  ;;  %1509 = vmatpush1.bf16.msra.mxu1 %v3994_v42  ;;  %v4026_v42 = vld [vmem:[#allocation4 + $0x2cc] ss:$16 sps:$4 sm:$0xff]  }
  0xac   : > { %1510 = vmatprep.subr.bf16.mxu1 %v4002_v56  ;;  %v4042_v56 = vld [vmem:[#allocation4 + $0x268] ss:$16 sps:$4 sm:$0xff]  }
  0xae   : > { %1468 = vmatpush1.bf16.msra.mxu0 %v3958_v41  ;;  %v4023_v41 = vld [vmem:[#allocation4 + $0xac] ss:$16 sps:$4 sm:$0xff]  }
  0xaf   : > { %1469 = vmatprep.subr.bf16.mxu0 %v3963_v43  ;;  %1511 = vmatpush1.bf16.msra.mxu1 %v4000_v58  ;;  %v4021_v43 = vld [vmem:[#allocation4 + $0xa8] ss:$16 sps:$4 sm:$0xff]   ;;  %v4050_v58 = vld [vmem:[#allocation4 + $0x24c] ss:$16 sps:$4 sm:$0xff]  }
  0xb0   : > { %1512 = vmatprep.subr.bf16.mxu1 %v4008_v60  ;;  %v4048_v60 = vld [vmem:[#allocation4 + $0x248] ss:$16 sps:$4 sm:$0xff]  }
  0xb2   : > { %1470 = vmatpush1.bf16.msra.mxu0 %v3961_v44  ;;  %v4024_v44 = vld [vmem:[#allocation4 + $0x2c8] ss:$16 sps:$4 sm:$0xff]  }
  0xb3   : > { %1471 = vmatprep.subr.bf16.mxu0 %v3969_v45  ;;  %1513 = vmatpush1.bf16.msra.mxu1 %v4006_v62  ;;  %v4029_v45 = vld [vmem:[#allocation4 + $0x8c] ss:$16 sps:$4 sm:$0xff]  }
  0xb4   : > { %1541 = vmatprep.subr.bf16.mxu1 %v4014_v2  ;;  %v4056_v62 = vld [vmem:[#allocation4 + $0x22c] ss:$16 sps:$4 sm:$0xff]   ;;  %v4054_v2 = vld [vmem:[#allocation4 + $0x228] ss:$16 sps:$4 sm:$0xff]  }
  0xb6   : > { %1472 = vmatpush2.bf16.msra.mxu0 %v3967_v46  ;;  %v4032_v46 = vld [vmem:[#allocation4 + $0x2ac] ss:$16 sps:$4 sm:$0xff]  }
  0xb7   : > { %1473 = vmatprep.subr.bf16.mxu0 %v3975_v47  ;;  %v4027_v47 = vld [vmem:[#allocation4 + $0x88] ss:$16 sps:$4 sm:$0xff]  }
  0xba   : > { %1474 = vmatpush2.bf16.msra.mxu0 %v3973_v48  ;;  %v4030_v48 = vld [vmem:[#allocation4 + $0x2a8] ss:$16 sps:$4 sm:$0xff]  }
  0xbb   : > { %1475 = vmatprep.subr.bf16.mxu0 %v3981_v49  ;;  %v4035_v49 = vld [vmem:[#allocation4 + $0x6c] ss:$16 sps:$4 sm:$0xff]  }
  0xbe   : > { %1476 = vmatpush2.bf16.msra.mxu0 %v3979_v50  ;;  %v4038_v50 = vld [vmem:[#allocation4 + $0x28c] ss:$16 sps:$4 sm:$0xff]  }
  0xbf   : > { %1477 = vmatprep.subr.bf16.mxu0 %v3987_v51  ;;  %v4033_v51 = vld [vmem:[#allocation4 + $0x68] ss:$16 sps:$4 sm:$0xff]  }
  0xc2   : > { %1478 = vmatpush2.bf16.msra.mxu0 %v3985_v52  ;;  %v4036_v52 = vld [vmem:[#allocation4 + $0x288] ss:$16 sps:$4 sm:$0xff]  }
  0xc3   : > { %1479 = vmatprep.subr.bf16.mxu0 %v3993_v53  ;;  %v4041_v53 = vld [vmem:[#allocation4 + $0x4c] ss:$16 sps:$4 sm:$0xff]  }
  0xc6   : > { %1480 = vmatpush2.bf16.msra.mxu0 %v3991_v54  ;;  %v4044_v54 = vld [vmem:[#allocation4 + $0x26c] ss:$16 sps:$4 sm:$0xff]  }
  0xc7   : > { %1481 = vmatprep.subr.bf16.mxu0 %v3999_v55  ;;  %v4039_v55 = vld [vmem:[#allocation4 + $0x48] ss:$16 sps:$4 sm:$0xff]  }
  0xca   : > { %1482 = vmatpush2.bf16.msra.mxu0 %v3997_v57  ;;  %v4047_v57 = vld [vmem:[#allocation4 + $0x2c] ss:$16 sps:$4 sm:$0xff]  }
  0xcb   : > { %1483 = vmatprep.subr.bf16.mxu0 %v4005_v59  ;;  %v4045_v59 = vld [vmem:[#allocation4 + $0x28] ss:$16 sps:$4 sm:$0xff]  }
  0xce   : > { %1484 = vmatpush2.bf16.msra.mxu0 %v4003_v61  ;;  %v4053_v61 = vld [vmem:[#allocation4 + $0xc] ss:$16 sps:$4 sm:$0xff]  }
  0xcf   : > { %1485 = vmatprep.subr.bf16.mxu0 %v4011_v63  ;;  %v4051_v63 = vld [vmem:[#allocation4 + $0x8] ss:$16 sps:$4 sm:$0xff]  }
  0xd2   : > { %1486 = vmatpush2.bf16.msra.mxu0 %v4009_v3  ;;  %v4059_v3 = vld [vmem:[#allocation4 + $0x1ec] ss:$16 sps:$4 sm:$0xff]  }
  0xd3   : > { %1584 = vmatprep.subr.bf16.mxu0 %v4020_v4  ;;  %v4062_v4 = vld [vmem:[#allocation4 + $0x20c] ss:$16 sps:$4 sm:$0xff]  }
 0x155   : > { %v841_v13 = vpop.f32.mrf.mxu1  ;;  %v798_v15 = vpop.f32.mrf.mxu0 }
 0x156   : > { %v842_v17 = vadd.f32 %v841_v13, %v692_v11  ;;  %v799_v18 = vadd.f32 %v798_v15, %v684_v12  ;;  %v4063_v13 = vld [vmem:[#allocation4 + $0x1c8] ss:$16 sps:$4 sm:$0xff]   ;;  %v4068_v15 = vld [vmem:[#allocation4 + $0x1ac] ss:$16 sps:$4 sm:$0xff]  }
 0x157   : > { %v3800_v16 = vpop.f32.mrf.mxu1  ;;  %v800_v19 = vpop.f32.mrf.mxu0 }
 0x158   : > { %v801_v20 = vadd.f32 %v800_v19, %v688_v14  ;;  %v850_v26 = vmax.f32 %v842_v17, 0.0  ;;  %v848_v27 = vmax.f32 %v799_v18, 0.0  ;;  %v4089_v16 = vld [vmem:[#allocation7 + $0x94] ss:$12 sps:$4 sm:$0xff]   ;;  %v4087_v18 = vld [vmem:[#allocation7 + $0x90] ss:$12 sps:$4 sm:$0xff]  }
 0x159   : > { %v844_v21 = vpop.f32.mrf.mxu1  ;;  %v802_v23 = vpop.f32.mrf.mxu0  ;;  %v4066_v17 = vld [vmem:[#allocation4 + $0x1a8] ss:$16 sps:$4 sm:$0xff]   ;;  %v4071_v19 = vld [vmem:[#allocation4 + $0x18c] ss:$16 sps:$4 sm:$0xff]  }
 0x15a   : > { %v845_v22 = vadd.f32 %v844_v21, %v692_v11  ;;  %v803_v24 = vadd.f32 %v802_v23, %v684_v12  ;;  %v849_v30 = vmax.f32 %v801_v20, 0.0  ;;  %v4065_v11 = vld [vmem:[#allocation4 + $0x1cc] ss:$16 sps:$4 sm:$0xff]   ;;  %v4069_v21 = vld [vmem:[#allocation4 + $0x188] ss:$16 sps:$4 sm:$0xff]  }
 0x15b   : > { %v3801_v25 = vpop.f32.mrf.mxu1  ;;  %v804_v29 = vpop.f32.mrf.mxu0  ;;  %v4086_v12 = vld [vmem:[#allocation7 + $0xac] ss:$12 sps:$4 sm:$0xff]   ;;  %v4092_v20 = vld [vmem:[#allocation7 + $0x7c] ss:$12 sps:$4 sm:$0xff]  }
 0x15c   : > { %v853_v28 = vmax.f32 %v845_v22, 0.0  ;;  %v851_v31 = vmax.f32 %v803_v24, 0.0  ;;  %v805_v32 = vadd.f32 %v804_v29, %v688_v14  ;;  %v4084_v14 = vld [vmem:[#allocation7 + $0xa8] ss:$12 sps:$4 sm:$0xff]   ;;  %v4090_v22 = vld [vmem:[#allocation7 + $0x78] ss:$12 sps:$4 sm:$0xff]  }
 0x15d   : > { %v4074_v23 = vld [vmem:[#allocation4 + $0x16c] ss:$16 sps:$4 sm:$0xff]   ;;  %v4095_v24 = vld [vmem:[#allocation7 + $0x64] ss:$12 sps:$4 sm:$0xff]  }
 0x15e   : > { %v4816_v34 = vpack.c.bf16 %v853_v28, %v850_v26  ;;  %v852_v36 = vmax.f32 %v805_v32, 0.0  ;;  %v4818_v37 = vpack.c.bf16 %v851_v31, %v848_v27  ;;  %v4072_v25 = vld [vmem:[#allocation4 + $0x168] ss:$16 sps:$4 sm:$0xff]   ;;  %v4093_v26 = vld [vmem:[#allocation7 + $0x60] ss:$12 sps:$4 sm:$0xff]  }
 0x15f   : > { %v4077_v27 = vld [vmem:[#allocation4 + $0x14c] ss:$16 sps:$4 sm:$0xff]   ;;  %v4075_v29 = vld [vmem:[#allocation4 + $0x148] ss:$16 sps:$4 sm:$0xff]  }
 0x160   : > { %1531 = vmatmul.mubr.bf16.vlgmr.msra.gmra.mxu1 %v4816_v34  ;;  %v855_v38 = vpack.c.bf16 %v852_v36, %v849_v30  ;;  %v4098_v28 = vld [vmem:[#allocation7 + $0x4c] ss:$12 sps:$4 sm:$0xff]   ;;  %v4096_v30 = vld [vmem:[#allocation7 + $0x48] ss:$12 sps:$4 sm:$0xff]  }
 0x161   : > { %1542 = vmatpush1.bf16.msra.mxu1 %v4012_v33  ;;  %v4080_v31 = vld [vmem:[#allocation4 + $0x12c] ss:$16 sps:$4 sm:$0xff]   ;;  %v4101_v32 = vld [vmem:[#allocation7 + $0x34] ss:$12 sps:$4 sm:$0xff]  }
 0x162   : > { %1543 = vmatprep.subr.bf16.mxu1 %v4017_v35  ;;  %1487 = vmatprep.mubr.bf16.mxu0 %v855_v38  ;;  %v4078_v33 = vld [vmem:[#allocation4 + $0x128] ss:$16 sps:$4 sm:$0xff]   ;;  %v4083_v35 = vld [vmem:[#allocation4 + $0x10c] ss:$16 sps:$4 sm:$0xff]  }
 0x163   : > { %1573 = vmatprep.mubr.bf16.mxu1 %v855_v38  ;;  %1488 = vmatmul.mubr.bf16.vlgmr.msra.gmra.mxu0 %v4818_v37  ;;  %v4104_v36 = vld [vmem:[#allocation7 + $0x1c] ss:$12 sps:$4 sm:$0xff]   ;;  %v4081_v38 = vld [vmem:[#allocation4 + $0x108] ss:$16 sps:$4 sm:$0xff]  }
 0x164   : > { %1585 = vmatpush1.bf16.msra.mxu0 %v4018_v40  ;;  %1616 = vmatprep.mubr.bf16.mxu0 %v4557_v1  ;;  %v4107_v40 = vld [vmem:[#allocation7 + $0x4] ss:$12 sps:$4 sm:$0xff]  }
 0x165   : > { %1544 = vmatpush1.bf16.msra.mxu1 %v4015_v39  ;;  %1586 = vmatprep.subr.bf16.mxu0 %v4026_v42  ;;  %v4102_v39 = vld [vmem:[#allocation7 + $0x18] ss:$12 sps:$4 sm:$0xff]  }
 0x166   : > { %1545 = vmatprep.subr.bf16.mxu1 %v4023_v41  ;;  %v4105_v41 = vld [vmem:[#allocation7] ss:$12 sps:$4 sm:$0xff]  }
 0x167   : > { %v4110_v42 = vld [vmem:[#allocation7 + $0x16c] ss:$12 sps:$4 sm:$0xff]  }
 0x168   : > { %1587 = vmatpush1.bf16.msra.mxu0 %v4024_v44  ;;  %v4113_v44 = vld [vmem:[#allocation7 + $0x154] ss:$12 sps:$4 sm:$0xff]  }
 0x169   : > { %1546 = vmatpush1.bf16.msra.mxu1 %v4021_v43  ;;  %1588 = vmatprep.subr.bf16.mxu0 %v4032_v46  ;;  %v4108_v43 = vld [vmem:[#allocation7 + $0x168] ss:$12 sps:$4 sm:$0xff]  }
 0x16a   : > { %1547 = vmatprep.subr.bf16.mxu1 %v4029_v45  ;;  %v4111_v45 = vld [vmem:[#allocation7 + $0x150] ss:$12 sps:$4 sm:$0xff]  }
 0x16b   : > { %v4116_v46 = vld [vmem:[#allocation7 + $0x13c] ss:$12 sps:$4 sm:$0xff]  }
 0x16c   : > { %1589 = vmatpush1.bf16.msra.mxu0 %v4030_v48  ;;  %v4119_v48 = vld [vmem:[#allocation7 + $0x124] ss:$12 sps:$4 sm:$0xff]  }
 0x16d   : > { %1548 = vmatpush1.bf16.msra.mxu1 %v4027_v47  ;;  %1590 = vmatprep.subr.bf16.mxu0 %v4038_v50  ;;  %v4114_v47 = vld [vmem:[#allocation7 + $0x138] ss:$12 sps:$4 sm:$0xff]  }
 0x16e   : > { %1549 = vmatprep.subr.bf16.mxu1 %v4035_v49  ;;  %v4117_v49 = vld [vmem:[#allocation7 + $0x120] ss:$12 sps:$4 sm:$0xff]  }
 0x16f   : > { %v4131_v50 = vld [vmem:[#allocation7 + $0x22c] ss:$12 sps:$4 sm:$0xff]  }
 0x170   : > { %1591 = vmatpush1.bf16.msra.mxu0 %v4036_v52  ;;  %v4129_v52 = vld [vmem:[#allocation7 + $0x228] ss:$12 sps:$4 sm:$0xff]  }
 0x171   : > { %1550 = vmatpush1.bf16.msra.mxu1 %v4033_v51  ;;  %1592 = vmatprep.subr.bf16.mxu0 %v4044_v54  ;;  %v4122_v51 = vld [vmem:[#allocation7 + $0x10c] ss:$12 sps:$4 sm:$0xff]   ;;  %v4120_v54 = vld [vmem:[#allocation7 + $0x108] ss:$12 sps:$4 sm:$0xff]  }
 0x172   : > { %1551 = vmatprep.subr.bf16.mxu1 %v4041_v53  ;;  %v4135_v53 = vld [vmem:[#allocation7 + $0x210] ss:$12 sps:$4 sm:$0xff]  }
 0x174   : > { %1593 = vmatpush1.bf16.msra.mxu0 %v4042_v56  ;;  %v4123_v56 = vld [vmem:[#allocation7 + $0xf0] ss:$12 sps:$4 sm:$0xff]  }
 0x175   : > { %1552 = vmatpush1.bf16.msra.mxu1 %v4039_v55  ;;  %1594 = vmatprep.subr.bf16.mxu0 %v4050_v58  ;;  %v4125_v55 = vld [vmem:[#allocation7 + $0xf4] ss:$12 sps:$4 sm:$0xff]   ;;  %v4142_v58 = vld [vmem:[#allocation7 + $0x1fc] ss:$12 sps:$4 sm:$0xff]  }
 0x176   : > { %1553 = vmatprep.subr.bf16.mxu1 %v4047_v57  ;;  %v4140_v57 = vld [vmem:[#allocation7 + $0x1f8] ss:$12 sps:$4 sm:$0xff]  }
 0x178   : > { %1595 = vmatpush1.bf16.msra.mxu0 %v4048_v60  ;;  %v4126_v60 = vld [vmem:[#allocation7 + $0xd8] ss:$12 sps:$4 sm:$0xff]  }
 0x179   : > { %1554 = vmatpush1.bf16.msra.mxu1 %v4045_v59  ;;  %1596 = vmatprep.subr.bf16.mxu0 %v4056_v62  ;;  %v4128_v59 = vld [vmem:[#allocation7 + $0xdc] ss:$12 sps:$4 sm:$0xff]   ;;  %v4147_v62 = vld [vmem:[#allocation7 + $0x1e4] ss:$12 sps:$4 sm:$0xff]  }
 0x17a   : > { %1555 = vmatprep.subr.bf16.mxu1 %v4053_v61  ;;  %v4145_v61 = vld [vmem:[#allocation7 + $0x1e0] ss:$12 sps:$4 sm:$0xff]  }
 0x17c   : > { %1597 = vmatpush1.bf16.msra.mxu0 %v4054_v2  ;;  %v4132_v2 = vld [vmem:[#allocation7 + $0xc0] ss:$12 sps:$4 sm:$0xff]  }
 0x17d   : > { %1556 = vmatpush1.bf16.msra.mxu1 %v4051_v63  ;;  %1598 = vmatprep.subr.bf16.mxu0 %v4062_v4  ;;  %v4134_v63 = vld [vmem:[#allocation7 + $0xc4] ss:$12 sps:$4 sm:$0xff]   ;;  %v4152_v4 = vld [vmem:[#allocation7 + $0x1cc] ss:$12 sps:$4 sm:$0xff]  }
 0x17e   : > { %1557 = vmatprep.subr.bf16.mxu1 %v4059_v3  ;;  %v4150_v3 = vld [vmem:[#allocation7 + $0x1c8] ss:$12 sps:$4 sm:$0xff]  }
 0x180   : > { %1599 = vmatpush1.bf16.msra.mxu0 %v4060_v9  ;;  %v4155_v9 = vld [vmem:[#allocation7 + $0x1b0] ss:$12 sps:$4 sm:$0xff]  }
 0x181   : > { %1558 = vmatpush2.bf16.msra.mxu1 %v4057_v5  ;;  %2296 = vmatprep.subr.bf16.mxu0 %v4086_v12  ;;  %v4138_v5 = vld [vmem:[#allocation7 + $0x170] ss:$12 sps:$4 sm:$0xff]  }
 0x182   : > { %1559 = vmatprep.subr.bf16.mxu1 %v4065_v11  ;;  %v4157_v11 = vld [vmem:[#allocation7 + $0x1b4] ss:$12 sps:$4 sm:$0xff]   ;;  %v4162_v12 = vld [vmem:[#allocation7 + $0x19c] ss:$12 sps:$4 sm:$0xff]  }
 0x183   : > { %1617 = vmatmul.mubr.bf16.vlgmr.msra.gmra.mxu0 %v4816_v34  ;;  %v4099_v34 = vld [vmem:[#allocation7 + $0x30] ss:$12 sps:$4 sm:$0xff]  }
 0x184   : > { %2297 = vmatpush1.bf16.msra.mxu0 %v4084_v14  ;;  %v4167_v14 = vld [vmem:[#allocation7 + $0x184] ss:$12 sps:$4 sm:$0xff]  }
 0x185   : > { %1560 = vmatpush2.bf16.msra.mxu1 %v4063_v13  ;;  %2298 = vmatprep.subr.bf16.mxu0 %v4089_v16  ;;  %v4160_v13 = vld [vmem:[#allocation7 + $0x198] ss:$12 sps:$4 sm:$0xff]   ;;  %v4170_v16 = vld [vmem:[#allocation7 + $0x2e8] ss:$12 sps:$4 sm:$0xff]  }
 0x186   : > { %1561 = vmatprep.subr.bf16.mxu1 %v4068_v15  ;;  %v4165_v15 = vld [vmem:[#allocation7 + $0x180] ss:$12 sps:$4 sm:$0xff]  }
 0x188   : > { %2299 = vmatpush1.bf16.msra.mxu0 %v4087_v18  ;;  %v4175_v18 = vld [vmem:[#allocation7 + $0x2d0] ss:$12 sps:$4 sm:$0xff]  }
 0x189   : > { %1562 = vmatpush2.bf16.msra.mxu1 %v4066_v17  ;;  %2300 = vmatprep.subr.bf16.mxu0 %v4092_v20  ;;  %v4172_v17 = vld [vmem:[#allocation7 + $0x2ec] ss:$12 sps:$4 sm:$0xff]  }
 0x18a   : > { %1563 = vmatprep.subr.bf16.mxu1 %v4071_v19  ;;  %v4177_v19 = vld [vmem:[#allocation7 + $0x2d4] ss:$12 sps:$4 sm:$0xff]   ;;  %v4178_v20 = vld [vmem:[#allocation7 + $0x2b8] ss:$12 sps:$4 sm:$0xff]  }
 0x18c   : > { %2301 = vmatpush1.bf16.msra.mxu0 %v4090_v22  ;;  %v4183_v22 = vld [vmem:[#allocation7 + $0x2a4] ss:$12 sps:$4 sm:$0xff]  }
 0x18d   : > { %1564 = vmatpush2.bf16.msra.mxu1 %v4069_v21  ;;  %2302 = vmatprep.subr.bf16.mxu0 %v4095_v24  ;;  %v4180_v21 = vld [vmem:[#allocation7 + $0x2bc] ss:$12 sps:$4 sm:$0xff]   ;;  %v4186_v24 = vld [vmem:[#allocation7 + $0x28c] ss:$12 sps:$4 sm:$0xff]  }
 0x18e   : > { %1565 = vmatprep.subr.bf16.mxu1 %v4074_v23  ;;  %v4181_v23 = vld [vmem:[#allocation7 + $0x2a0] ss:$12 sps:$4 sm:$0xff]  }
 0x190   : > { %2303 = vmatpush1.bf16.msra.mxu0 %v4093_v26  ;;  %v4189_v26 = vld [vmem:[#allocation7 + $0x274] ss:$12 sps:$4 sm:$0xff]  }
 0x191   : > { %1566 = vmatpush2.bf16.msra.mxu1 %v4072_v25  ;;  %2304 = vmatprep.subr.bf16.mxu0 %v4098_v28  ;;  %v4184_v25 = vld [vmem:[#allocation7 + $0x288] ss:$12 sps:$4 sm:$0xff]  }
 0x192   : > { %1567 = vmatprep.subr.bf16.mxu1 %v4077_v27  ;;  %v4187_v27 = vld [vmem:[#allocation7 + $0x270] ss:$12 sps:$4 sm:$0xff]  }
 0x193   : > { %v4192_v28 = vld [vmem:[#allocation7 + $0x25c] ss:$12 sps:$4 sm:$0xff]  }
 0x194   : > { %2305 = vmatpush1.bf16.msra.mxu0 %v4096_v30  ;;  %v4195_v30 = vld [vmem:[#allocation7 + $0x244] ss:$12 sps:$4 sm:$0xff]  }
 0x195   : > { %1568 = vmatpush2.bf16.msra.mxu1 %v4075_v29  ;;  %2306 = vmatprep.subr.bf16.mxu0 %v4101_v32  ;;  %v4190_v29 = vld [vmem:[#allocation7 + $0x258] ss:$12 sps:$4 sm:$0xff]   ;;  %v4196_v32 = vld [vmem:[#allocation7 + $0x2f0] ss:$12 sps:$4 sm:$0xff]  }
 0x196   : > { %1569 = vmatprep.subr.bf16.mxu1 %v4080_v31  ;;  %v4193_v31 = vld [vmem:[#allocation7 + $0x240] ss:$12 sps:$4 sm:$0xff]  }
 0x198   : > { %2307 = vmatpush1.bf16.msra.mxu0 %v4099_v34  ;;  %v953_v34 = vld [vmem:[#allocation6] sm:$0xf] }
 0x199   : > { %1570 = vmatpush2.bf16.msra.mxu1 %v4078_v33  ;;  %2308 = vmatprep.subr.bf16.mxu0 %v4104_v36 }
 0x19a   : > { %1571 = vmatprep.subr.bf16.mxu1 %v4083_v35  ;;  %v962_v35 = vrot.slane %v953_v34, %v4811_v10 }
 0x19c   : > { %2309 = vmatpush1.bf16.msra.mxu0 %v4102_v39 }
 0x19d   : > { %1572 = vmatpush2.bf16.msra.mxu1 %v4081_v38  ;;  %2310 = vmatprep.subr.bf16.mxu0 %v4107_v40  ;;  %v958_v38 = vrot.slane %v953_v34, %v4805_v8 }
 0x19e   : > { %2339 = vmatprep.subr.bf16.mxu1 %v4131_v50 }
 0x1a0   : > { %1574 = vmatmul.mubr.bf16.vlgmr.msra.gmra.mxu1 %v4818_v37  ;;  %2311 = vmatpush1.bf16.msra.mxu0 %v4105_v41  ;;  %v4137_v37 = vld [vmem:[#allocation7 + $0x214] ss:$12 sps:$4 sm:$0xff]  }
 0x1a1   : > { %2312 = vmatprep.subr.bf16.mxu0 %v4110_v42  ;;  %2340 = vmatpush1.bf16.msra.mxu1 %v4129_v52 }
 0x1a2   : > { %2341 = vmatprep.subr.bf16.mxu1 %v4137_v37 }
 0x1a4   : > { %2313 = vmatpush2.bf16.msra.mxu0 %v4108_v43 }
 0x1a5   : > { %2314 = vmatprep.subr.bf16.mxu0 %v4113_v44  ;;  %2342 = vmatpush1.bf16.msra.mxu1 %v4135_v53 }
 0x1a6   : > { %2343 = vmatprep.subr.bf16.mxu1 %v4142_v58 }
 0x1a8   : > { %2315 = vmatpush2.bf16.msra.mxu0 %v4111_v45 }
 0x1a9   : > { %2316 = vmatprep.subr.bf16.mxu0 %v4116_v46  ;;  %2344 = vmatpush1.bf16.msra.mxu1 %v4140_v57  ;;  %v4139_v57 = vld [vmem:[#allocation7 + $0xb0] ss:$12 sps:$4 sm:$0xff]  }
 0x1aa   : > { %2345 = vmatprep.subr.bf16.mxu1 %v4147_v62  ;;  %v4149_v62 = vld [vmem:[#allocation7 + $0x80] ss:$12 sps:$4 sm:$0xff]  }
 0x1ac   : > { %2317 = vmatpush2.bf16.msra.mxu0 %v4114_v47 }
 0x1ad   : > { %2318 = vmatprep.subr.bf16.mxu0 %v4119_v48  ;;  %2346 = vmatpush1.bf16.msra.mxu1 %v4145_v61  ;;  %v4148_v61 = vld [vmem:[#allocation7 + $0x140] ss:$12 sps:$4 sm:$0xff]  }
 0x1ae   : > { %2347 = vmatprep.subr.bf16.mxu1 %v4152_v4  ;;  %v4159_v4 = vld [vmem:[#allocation7 + $0x50] ss:$12 sps:$4 sm:$0xff]  }
 0x1b0   : > { %2319 = vmatpush2.bf16.msra.mxu0 %v4117_v49 }
 0x1b1   : > { %2320 = vmatprep.subr.bf16.mxu0 %v4122_v51  ;;  %2348 = vmatpush1.bf16.msra.mxu1 %v4150_v3  ;;  %v4158_v3 = vld [vmem:[#allocation7 + $0x110] ss:$12 sps:$4 sm:$0xff]  }
 0x1b2   : > { %2349 = vmatprep.subr.bf16.mxu1 %v4157_v11  ;;  %v4168_v11 = vld [vmem:[#allocation7 + $0xe0] ss:$12 sps:$4 sm:$0xff]  }
 0x1b4   : > { %2321 = vmatpush2.bf16.msra.mxu0 %v4120_v54 }
 0x1b5   : > { %2322 = vmatprep.subr.bf16.mxu0 %v4125_v55  ;;  %2350 = vmatpush1.bf16.msra.mxu1 %v4155_v9  ;;  %v4164_v9 = vld [vmem:[#allocation7 + $0x38] ss:$12 sps:$4 sm:$0xff]  }
 0x1b6   : > { %2351 = vmatprep.subr.bf16.mxu1 %v4162_v12  ;;  %v4169_v12 = vld [vmem:[#allocation7 + $0x20] ss:$12 sps:$4 sm:$0xff]  }
 0x1b8   : > { %2323 = vmatpush2.bf16.msra.mxu0 %v4123_v56 }
 0x1b9   : > { %2324 = vmatprep.subr.bf16.mxu0 %v4128_v59  ;;  %2352 = vmatpush1.bf16.msra.mxu1 %v4160_v13  ;;  %v4143_v59 = vld [vmem:[#allocation7 + $0x158] ss:$12 sps:$4 sm:$0xff]   ;;  %v4173_v13 = vld [vmem:[#allocation7 + $0xc8] ss:$12 sps:$4 sm:$0xff]  }
 0x1ba   : > { %2353 = vmatprep.subr.bf16.mxu1 %v4167_v14  ;;  %v4174_v14 = vld [vmem:[#allocation7 + $0x8] ss:$12 sps:$4 sm:$0xff]  }
 0x1bc   : > { %2325 = vmatpush2.bf16.msra.mxu0 %v4126_v60  ;;  %v4144_v60 = vld [vmem:[#allocation7 + $0x98] ss:$12 sps:$4 sm:$0xff]  }
 0x1bd   : > { %2326 = vmatprep.subr.bf16.mxu0 %v4134_v63  ;;  %2354 = vmatpush1.bf16.msra.mxu1 %v4165_v15  ;;  %v4153_v63 = vld [vmem:[#allocation7 + $0x128] ss:$12 sps:$4 sm:$0xff]   ;;  %v969_v15 = vsub.s32 3, %v4799_v6 }
 0x1be   : > { %2355 = vmatprep.subr.bf16.mxu1 %v4172_v17 }
 0x1bf   : > { %v970_v17 = vrot.slane %v953_v34, %v969_v15  ;;  %v4244_v15 = vld [vmem:[%s5083_s7 + $0xd4] ss:$8 sps:$4 sm:$0xff]  }
 0x1c0   : > { %2327 = vmatpush2.bf16.msra.mxu0 %v4132_v2  ;;  %v4154_v2 = vld [vmem:[#allocation7 + $0x68] ss:$12 sps:$4 sm:$0xff]  }
 0x1c1   : > { %3714 = vmatprep.subr.bf16.mxu0 %v4138_v5  ;;  %2356 = vmatpush2.bf16.msra.mxu1 %v4170_v16  ;;  %v4163_v5 = vld [vmem:[#allocation7 + $0xf8] ss:$12 sps:$4 sm:$0xff]  }
 0x1c2   : > { %2357 = vmatprep.subr.bf16.mxu1 %v4177_v19  ;;  %v966_v19 = vrot.slane %v953_v34, %v4802_v7  ;;  %v4197_v34 = vld [vmem:[#allocation7 + $0x230] ss:$12 sps:$4 sm:$0xff]  }
 0x1c5   : > { %2358 = vmatpush2.bf16.msra.mxu1 %v4175_v18 }
 0x1c6   : > { %2359 = vmatprep.subr.bf16.mxu1 %v4180_v21 }
 0x1c9   : > { %2360 = vmatpush2.bf16.msra.mxu1 %v4178_v20 }
 0x1ca   : > { %2361 = vmatprep.subr.bf16.mxu1 %v4183_v22 }
 0x1cd   : > { %2362 = vmatpush2.bf16.msra.mxu1 %v4181_v23 }
 0x1ce   : > { %2363 = vmatprep.subr.bf16.mxu1 %v4186_v24 }
 0x1d1   : > { %2364 = vmatpush2.bf16.msra.mxu1 %v4184_v25 }
 0x1d2   : > { %2365 = vmatprep.subr.bf16.mxu1 %v4189_v26 }
 0x1d5   : > { %2366 = vmatpush2.bf16.msra.mxu1 %v4187_v27 }
 0x1d6   : > { %2367 = vmatprep.subr.bf16.mxu1 %v4192_v28 }
 0x1d9   : > { %2368 = vmatpush2.bf16.msra.mxu1 %v4190_v29 }
 0x1da   : > { %2369 = vmatprep.subr.bf16.mxu1 %v4195_v30 }
 0x1dd   : > { %2370 = vmatpush2.bf16.msra.mxu1 %v4193_v31 }
 0x1de   : > { %3736 = vmatprep.subr.bf16.mxu1 %v4196_v32 }
 0x220   : > { %v1532_v33 = vpop.f32.mrf.mxu1 }
 0x222   : > { %v1534_v36 = vpop.f32.mrf.mxu1 }
 0x223   : > { %v1489_v39 = vpop.f32.mrf.mxu0 }
 0x224   : > { %v1490_v42 = vadd.f32 %v1489_v39, %v958_v38  ;;  %v1536_v43 = vpop.f32.mrf.mxu1 }
 0x225   : > { %v1491_v40 = vpop.f32.mrf.mxu0 }
 0x226   : > { %v1492_v41 = vadd.f32 %v1491_v40, %v962_v35  ;;  %v1533_v50 = vadd.f32 %v1532_v33, %v1490_v42  ;;  %v1538_v51 = vpop.f32.mrf.mxu1  ;;  %v4199_v42 = vld [vmem:[#allocation7 + $0x218] ss:$12 sps:$4 sm:$0xff]  }
 0x227   : > { %v1493_v44 = vpop.f32.mrf.mxu0 }
 0x228   : > { %v1494_v45 = vadd.f32 %v1493_v44, %v958_v38  ;;  %v1535_v47 = vadd.f32 %v1534_v36, %v1492_v41  ;;  %v1627_v55 = vmax.f32 %v1533_v50, 0.0  ;;  %v4198_v41 = vld [vmem:[#allocation7 + $0x2d8] ss:$12 sps:$4 sm:$0xff]   ;;  %v4201_v44 = vld [vmem:[#allocation7 + $0x200] ss:$12 sps:$4 sm:$0xff]  }
 0x229   : > { %v1495_v46 = vpop.f32.mrf.mxu0  ;;  %v4217_v50 = vld [vmem:[%s5083_s7 + $0x64] ss:$8 sps:$4 sm:$0xff]  }
 0x22a   : > { %v1537_v48 = vadd.f32 %v1536_v43, %v1494_v45  ;;  %v1496_v49 = vadd.f32 %v1495_v46, %v962_v35  ;;  %v1628_v53 = vmax.f32 %v1535_v47, 0.0  ;;  %v4200_v43 = vld [vmem:[#allocation7 + $0x2c0] ss:$12 sps:$4 sm:$0xff]   ;;  %v4202_v45 = vld [vmem:[#allocation7 + $0x2a8] ss:$12 sps:$4 sm:$0xff]  }
 0x22b   : > { %v4203_v46 = vld [vmem:[#allocation7 + $0x1e8] ss:$12 sps:$4 sm:$0xff]   ;;  %v4204_v47 = vld [vmem:[#allocation7 + $0x290] ss:$12 sps:$4 sm:$0xff]  }
 0x22c   : > { %v1539_v52 = vadd.f32 %v1538_v51, %v1496_v49  ;;  %v1631_v37 = vmax.f32 %v1537_v48, 0.0  ;;  %v4212_v48 = vld [vmem:[%s5083_s7 + $0x70] ss:$8 sps:$4 sm:$0xff]   ;;  %v4214_v49 = vld [vmem:[%s5083_s7 + $0x74] ss:$8 sps:$4 sm:$0xff]  }
 0x22d   : > { %v4205_v51 = vld [vmem:[#allocation7 + $0x1d0] ss:$12 sps:$4 sm:$0xff]  }
 0x22e   : > { %v1632_v54 = vmax.f32 %v1539_v52, 0.0  ;;  %v1635_v58 = vpack.c.bf16 %v1631_v37, %v1627_v55  ;;  %v4206_v52 = vld [vmem:[#allocation7 + $0x278] ss:$12 sps:$4 sm:$0xff]   ;;  %v4208_v55 = vld [vmem:[#allocation7 + $0x260] ss:$12 sps:$4 sm:$0xff]  }
 0x22f   : > { %v4215_v37 = vld [vmem:[%s5083_s7 + $0x60] ss:$8 sps:$4 sm:$0xff]  }
 0x230   : > { %v1636_v56 = vpack.c.bf16 %v1632_v54, %v1628_v53  ;;  %v4220_v53 = vld [vmem:[%s5083_s7 + $0x54] ss:$8 sps:$4 sm:$0xff]  }
 0x231   : > { %v4207_v54 = vld [vmem:[#allocation7 + $0x1b8] ss:$12 sps:$4 sm:$0xff]  }
 0x232   : > { %2328 = vmatprep.mubr.bf16.mxu0 %v1636_v56 }
 0x233   : > { %2329 = vmatmul.mubr.bf16.vlgmr.msra.gmra.mxu0 %v1635_v58 }
 0x234   : > { %3715 = vmatpush3.bf16.msra.mxu0 %v4139_v57  ;;  %2414 = vmatprep.mubr.bf16.mxu0 %v1636_v56  ;;  %v4218_v56 = vld [vmem:[%s5083_s7 + $0x50] ss:$8 sps:$4 sm:$0xff]   ;;  %v4223_v57 = vld [vmem:[%s5083_s7 + $0x44] ss:$8 sps:$4 sm:$0xff]  }
 0x235   : > { %3716 = vmatprep.subr.bf16.mxu0 %v4143_v59  ;;  %v4210_v59 = vld [vmem:[#allocation7 + $0x248] ss:$12 sps:$4 sm:$0xff]  }
 0x238   : > { %3717 = vmatpush3.bf16.msra.mxu0 %v4144_v60  ;;  %v4221_v60 = vld [vmem:[%s5083_s7 + $0x40] ss:$8 sps:$4 sm:$0xff]  }
 0x239   : > { %3718 = vmatprep.subr.bf16.mxu0 %v4148_v61  ;;  %v4226_v61 = vld [vmem:[%s5083_s7 + $0x34] ss:$8 sps:$4 sm:$0xff]  }
 0x23c   : > { %3719 = vmatpush3.bf16.msra.mxu0 %v4149_v62  ;;  %v4211_v62 = vld [vmem:[#allocation7 + $0x188] ss:$12 sps:$4 sm:$0xff]  }
 0x23d   : > { %3720 = vmatprep.subr.bf16.mxu0 %v4153_v63  ;;  %v4224_v63 = vld [vmem:[%s5083_s7 + $0x30] ss:$8 sps:$4 sm:$0xff]  }
 0x240   : > { %3721 = vmatpush3.bf16.msra.mxu0 %v4154_v2  ;;  %v4229_v2 = vld [vmem:[%s5083_s7 + $0x24] ss:$8 sps:$4 sm:$0xff]  }
 0x241   : > { %3722 = vmatprep.subr.bf16.mxu0 %v4158_v3  ;;  %v4227_v3 = vld [vmem:[%s5083_s7 + $0x20] ss:$8 sps:$4 sm:$0xff]  }
 0x243   : > { %v1618_v16 = vpop.f32.mrf.mxu0 }
 0x244   : > { %3723 = vmatpush3.bf16.msra.mxu0 %v4159_v4  ;;  %v4232_v4 = vld [vmem:[%s5083_s7 + $0x14] ss:$8 sps:$4 sm:$0xff]  }
 0x245   : > { %3724 = vmatprep.subr.bf16.mxu0 %v4163_v5  ;;  %v1620_v18 = vpop.f32.mrf.mxu0  ;;  %v4230_v5 = vld [vmem:[%s5083_s7 + $0x10] ss:$8 sps:$4 sm:$0xff]  }
 0x247   : > { %v1622_v23 = vpop.f32.mrf.mxu0 }
 0x248   : > { %3725 = vmatpush3.bf16.msra.mxu0 %v4164_v9  ;;  %v4235_v9 = vld [vmem:[%s5083_s7 + $0x4] ss:$8 sps:$4 sm:$0xff]  }
 0x249   : > { %3726 = vmatprep.subr.bf16.mxu0 %v4168_v11  ;;  %v1624_v31 = vpop.f32.mrf.mxu0  ;;  %v4233_v11 = vld [vmem:[%s5083_s7] ss:$8 sps:$4 sm:$0xff]  }
 0x24c   : > { %3727 = vmatpush3.bf16.msra.mxu0 %v4169_v12  ;;  %v4238_v12 = vld [vmem:[%s5083_s7 + $0xf4] ss:$8 sps:$4 sm:$0xff]  }
 0x24d   : > { %3728 = vmatprep.subr.bf16.mxu0 %v4173_v13  ;;  %v4241_v13 = vld [vmem:[%s5083_s7 + $0xe4] ss:$8 sps:$4 sm:$0xff]  }
 0x250   : > { %3729 = vmatpush3.bf16.msra.mxu0 %v4174_v14  ;;  %v4239_v14 = vld [vmem:[%s5083_s7 + $0xe0] ss:$8 sps:$4 sm:$0xff]  }
 0x251   : > { %2773 = vmatprep.subr.bf16.mxu0 %v4214_v49 }
 0x253   : > { %2415 = vmatmul.mubr.bf16.vlgmr.msra.gmra.mxu0 %v1635_v58  ;;  %v4209_v58 = vld [vmem:[#allocation7 + $0x1a0] ss:$12 sps:$4 sm:$0xff]  }
 0x254   : > { %2774 = vmatpush1.bf16.msra.mxu0 %v4212_v48 }
 0x255   : > { %2775 = vmatprep.subr.bf16.mxu0 %v4217_v50 }
 0x258   : > { %2776 = vmatpush1.bf16.msra.mxu0 %v4215_v37 }
 0x259   : > { %2777 = vmatprep.subr.bf16.mxu0 %v4220_v53 }
 0x25c   : > { %2778 = vmatpush1.bf16.msra.mxu0 %v4218_v56 }
 0x25d   : > { %2779 = vmatprep.subr.bf16.mxu0 %v4223_v57 }
 0x260   : > { %v1575_v20 = vpop.f32.mrf.mxu1  ;;  %2780 = vmatpush1.bf16.msra.mxu0 %v4221_v60 }
 0x261   : > { %v1576_v24 = vadd.f32 %v1575_v20, %v966_v19  ;;  %2781 = vmatprep.subr.bf16.mxu0 %v4226_v61  ;;  %v4248_v20 = vld [vmem:[%s5083_s7 + $0xb0] ss:$8 sps:$4 sm:$0xff]  }
 0x262   : > { %v1577_v21 = vpop.f32.mrf.mxu1 }
 0x263   : > { %v1578_v22 = vadd.f32 %v1577_v21, %v970_v17  ;;  %v1619_v32 = vadd.f32 %v1618_v16, %v1576_v24  ;;  %v4242_v16 = vld [vmem:[%s5083_s7 + $0xd0] ss:$8 sps:$4 sm:$0xff]   ;;  %v4253_v21 = vld [vmem:[%s5083_s7 + $0xa4] ss:$8 sps:$4 sm:$0xff]  }
 0x264   : > { %v1579_v25 = vpop.f32.mrf.mxu1  ;;  %2782 = vmatpush1.bf16.msra.mxu0 %v4224_v63  ;;  %v4254_v24 = vld [vmem:[%s5083_s7 + $0x90] ss:$8 sps:$4 sm:$0xff]  }
 0x265   : > { %v1580_v26 = vadd.f32 %v1579_v25, %v966_v19  ;;  %v1621_v28 = vadd.f32 %v1620_v18, %v1578_v22  ;;  %v1629_v38 = vmax.f32 %v1619_v32, 0.0  ;;  %2783 = vmatprep.subr.bf16.mxu0 %v4229_v2  ;;  %v4245_v18 = vld [vmem:[%s5083_s7 + $0xc0] ss:$8 sps:$4 sm:$0xff]   ;;  %v4250_v19 = vld [vmem:[%s5083_s7 + $0xb4] ss:$8 sps:$4 sm:$0xff]  }
 0x266   : > { %v1581_v27 = vpop.f32.mrf.mxu1  ;;  %v4251_v22 = vld [vmem:[%s5083_s7 + $0xa0] ss:$8 sps:$4 sm:$0xff]   ;;  %v4259_v25 = vld [vmem:[%s5083_s7 + $0x84] ss:$8 sps:$4 sm:$0xff]   ;;  %v4266_v32 = vld [vmem:[%s5083_s7 + $0x150] ss:$8 sps:$4 sm:$0xff]  }
 0x267   : > { %v1623_v29 = vadd.f32 %v1622_v23, %v1580_v26  ;;  %v1582_v30 = vadd.f32 %v1581_v27, %v970_v17  ;;  %v1630_v35 = vmax.f32 %v1621_v28, 0.0  ;;  %v4247_v17 = vld [vmem:[%s5083_s7 + $0xc4] ss:$8 sps:$4 sm:$0xff]   ;;  %v4256_v23 = vld [vmem:[%s5083_s7 + $0x94] ss:$8 sps:$4 sm:$0xff]  }
 0x268   : > { %2784 = vmatpush1.bf16.msra.mxu0 %v4227_v3  ;;  %v4257_v26 = vld [vmem:[%s5083_s7 + $0x80] ss:$8 sps:$4 sm:$0xff]   ;;  %v4262_v27 = vld [vmem:[%s5083_s7 + $0x174] ss:$8 sps:$4 sm:$0xff]   ;;  %v4260_v28 = vld [vmem:[%s5083_s7 + $0x170] ss:$8 sps:$4 sm:$0xff]  }
 0x269   : > { %v1625_v33 = vadd.f32 %v1624_v31, %v1582_v30  ;;  %v1633_v6 = vmax.f32 %v1623_v29, 0.0  ;;  %2785 = vmatprep.subr.bf16.mxu0 %v4232_v4  ;;  %v4265_v29 = vld [vmem:[%s5083_s7 + $0x164] ss:$8 sps:$4 sm:$0xff]   ;;  %v4263_v30 = vld [vmem:[%s5083_s7 + $0x160] ss:$8 sps:$4 sm:$0xff]  }
 0x26a   : > { %v4268_v31 = vld [vmem:[%s5083_s7 + $0x154] ss:$8 sps:$4 sm:$0xff]  }
 0x26b   : > { %v1634_v36 = vmax.f32 %v1625_v33, 0.0  ;;  %v1637_v40 = vpack.c.bf16 %v1633_v6, %v1629_v38  ;;  %v4271_v33 = vld [vmem:[%s5083_s7 + $0x144] ss:$8 sps:$4 sm:$0xff]   ;;  %v4269_v6 = vld [vmem:[%s5083_s7 + $0x140] ss:$8 sps:$4 sm:$0xff]  }
 0x26c   : > { %2786 = vmatpush1.bf16.msra.mxu0 %v4230_v5  ;;  %v4277_v38 = vld [vmem:[%s5083_s7 + $0x124] ss:$8 sps:$4 sm:$0xff]  }
 0x26d   : > { %v1638_v39 = vpack.c.bf16 %v1634_v36, %v1630_v35  ;;  %2787 = vmatprep.subr.bf16.mxu0 %v4235_v9  ;;  %v4274_v35 = vld [vmem:[%s5083_s7 + $0x134] ss:$8 sps:$4 sm:$0xff]   ;;  %v4272_v36 = vld [vmem:[%s5083_s7 + $0x130] ss:$8 sps:$4 sm:$0xff]  }
 0x26f   : > { %2371 = vmatprep.mubr.bf16.mxu1 %v1638_v39 }
 0x270   : > { %2372 = vmatmul.mubr.bf16.vlgmr.msra.gmra.mxu1 %v1637_v40  ;;  %2788 = vmatpush1.bf16.msra.mxu0 %v4233_v11 }
 0x271   : > { %3737 = vmatpush3.bf16.msra.mxu1 %v4197_v34  ;;  %2455 = vmatprep.mubr.bf16.mxu1 %v1638_v39  ;;  %v4275_v39 = vld [vmem:[%s5083_s7 + $0x120] ss:$8 sps:$4 sm:$0xff]   ;;  %v4280_v34 = vld [vmem:[%s5083_s7 + $0x114] ss:$8 sps:$4 sm:$0xff]  }
 0x272   : > { %3738 = vmatprep.subr.bf16.mxu1 %v4198_v41  ;;  %2789 = vmatprep.subr.bf16.mxu0 %v4238_v12  ;;  %v4283_v41 = vld [vmem:[%s5083_s7 + $0x104] ss:$8 sps:$4 sm:$0xff]  }
 0x275   : > { %3739 = vmatpush3.bf16.msra.mxu1 %v4199_v42  ;;  %v4281_v42 = vld [vmem:[%s5083_s7 + $0x100] ss:$8 sps:$4 sm:$0xff]  }
 0x276   : > { %3740 = vmatprep.subr.bf16.mxu1 %v4200_v43 }
 0x279   : > { %3741 = vmatpush3.bf16.msra.mxu1 %v4201_v44 }
 0x27a   : > { %3742 = vmatprep.subr.bf16.mxu1 %v4202_v45  ;;  %v1767_v45 = vld [vmem:[%s5082_s6] sm:$0x7] }
 0x27b   : > { %v1772_v48 = vrot.slane %v1767_v45, %v4805_v8 }
 0x27d   : > { %3743 = vmatpush3.bf16.msra.mxu1 %v4203_v46 }
 0x27e   : > { %3744 = vmatprep.subr.bf16.mxu1 %v4204_v47  ;;  %v1776_v47 = vrot.slane %v1767_v45, %v4811_v10 }
 0x281   : > { %3745 = vmatpush3.bf16.msra.mxu1 %v4205_v51 }
 0x282   : > { %3746 = vmatprep.subr.bf16.mxu1 %v4206_v52 }
 0x285   : > { %3747 = vmatpush3.bf16.msra.mxu1 %v4207_v54 }
 0x286   : > { %3748 = vmatprep.subr.bf16.mxu1 %v4208_v55 }
 0x289   : > { %3749 = vmatpush3.bf16.msra.mxu1 %v4209_v58 }
 0x28a   : > { %3750 = vmatprep.subr.bf16.mxu1 %v4210_v59 }
 0x28d   : > { %3751 = vmatpush3.bf16.msra.mxu1 %v4211_v62 }
 0x28e   : > { %2816 = vmatprep.subr.bf16.mxu1 %v4262_v27 }
 0x290   : > { %2456 = vmatmul.mubr.bf16.vlgmr.msra.gmra.mxu1 %v1637_v40  ;;  %v4278_v40 = vld [vmem:[%s5083_s7 + $0x110] ss:$8 sps:$4 sm:$0xff]  }
 0x291   : > { %2848 = vmatprep.mubr.bf16.mxu1 %v4557_v1  ;;  %v4236_v1 = vld [vmem:[%s5083_s7 + $0xf0] ss:$8 sps:$4 sm:$0xff]   ;;  %2817 = vmatpush1.bf16.msra.mxu1 %v4260_v28 }
 0x292   : > { %2790 = vmatpush2.bf16.msra.mxu0 %v4236_v1  ;;  %2818 = vmatprep.subr.bf16.mxu1 %v4265_v29  ;;  %v4284_v28 = vld [vmem:[%s5085_s9 + $0x78] sm:$0xff]   ;;  %v4286_v29 = vld [vmem:[%s5085_s9 + $0x70] sm:$0xff]  }
 0x293   : > { %2791 = vmatprep.subr.bf16.mxu0 %v4241_v13  ;;  %v1780_v13 = vrot.slane %v1767_v45, %v4802_v7  ;;  %v4285_v7 = vld [vmem:[%s5085_s9 + $0x38] sm:$0xff]   ;;  %v2521_v45 = vld [vmem:[%s5084_s8] sm:$0x3] }
 0x295   : > { %2819 = vmatpush1.bf16.msra.mxu1 %v4263_v30  ;;  %v4287_v30 = vld [vmem:[%s5085_s9 + $0x30] sm:$0xff]  }
 0x296   : > { %2792 = vmatpush2.bf16.msra.mxu0 %v4239_v14  ;;  %2820 = vmatprep.subr.bf16.mxu1 %v4268_v31  ;;  %v4288_v31 = vld [vmem:[%s5085_s9 + $0x68] sm:$0xff]  }
 0x297   : > { %2793 = vmatprep.subr.bf16.mxu0 %v4244_v15 }
 0x299   : > { %2821 = vmatpush1.bf16.msra.mxu1 %v4266_v32  ;;  %v4289_v32 = vld [vmem:[%s5085_s9 + $0x28] sm:$0xff]  }
 0x29a   : > { %2794 = vmatpush2.bf16.msra.mxu0 %v4242_v16  ;;  %2822 = vmatprep.subr.bf16.mxu1 %v4271_v33  ;;  %v4290_v33 = vld [vmem:[%s5085_s9 + $0x60] sm:$0xff]  }
 0x29b   : > { %2795 = vmatprep.subr.bf16.mxu0 %v4247_v17 }
 0x29d   : > { %2823 = vmatpush1.bf16.msra.mxu1 %v4269_v6  ;;  %v4291_v6 = vld [vmem:[%s5085_s9 + $0x20] sm:$0xff]  }
 0x29e   : > { %2796 = vmatpush2.bf16.msra.mxu0 %v4245_v18  ;;  %2824 = vmatprep.subr.bf16.mxu1 %v4274_v35  ;;  %v4292_v35 = vld [vmem:[%s5085_s9 + $0x58] sm:$0xff]  }
 0x29f   : > { %2797 = vmatprep.subr.bf16.mxu0 %v4250_v19 }
 0x2a1   : > { %2825 = vmatpush1.bf16.msra.mxu1 %v4272_v36  ;;  %v4293_v36 = vld [vmem:[%s5085_s9 + $0x18] sm:$0xff]  }
 0x2a2   : > { %2798 = vmatpush2.bf16.msra.mxu0 %v4248_v20  ;;  %2826 = vmatprep.subr.bf16.mxu1 %v4277_v38  ;;  %v4294_v38 = vld [vmem:[%s5085_s9 + $0x50] sm:$0xff]  }
 0x2a3   : > { %2799 = vmatprep.subr.bf16.mxu0 %v4253_v21 }
 0x2a5   : > { %2827 = vmatpush1.bf16.msra.mxu1 %v4275_v39  ;;  %v4295_v39 = vld [vmem:[%s5085_s9 + $0x10] sm:$0xff]  }
 0x2a6   : > { %2800 = vmatpush2.bf16.msra.mxu0 %v4251_v22  ;;  %2828 = vmatprep.subr.bf16.mxu1 %v4280_v34  ;;  %v4296_v34 = vld [vmem:[%s5085_s9 + $0x48] sm:$0xff]  }
 0x2a7   : > { %2801 = vmatprep.subr.bf16.mxu0 %v4256_v23 }
 0x2a9   : > { %2829 = vmatpush1.bf16.msra.mxu1 %v4278_v40  ;;  %v4297_v40 = vld [vmem:[%s5085_s9 + $0x8] sm:$0xff]  }
 0x2aa   : > { %2802 = vmatpush2.bf16.msra.mxu0 %v4254_v24  ;;  %2830 = vmatprep.subr.bf16.mxu1 %v4283_v41  ;;  %v4298_v41 = vld [vmem:[%s5085_s9 + $0x40] sm:$0xff]  }
 0x2ab   : > { %2803 = vmatprep.subr.bf16.mxu0 %v4259_v25 }
 0x2ad   : > { %2831 = vmatpush1.bf16.msra.mxu1 %v4281_v42  ;;  %v4299_v42 = vld [vmem:[%s5085_s9] sm:$0xff]  }
 0x2ae   : > { %2804 = vmatpush2.bf16.msra.mxu0 %v4257_v26  ;;  %3758 = vmatprep.subr.bf16.mxu1 %v4284_v28 }
 0x2af   : > { %3802 = vmatprep.subr.bf16.mxu0 %v4555_v0 }
 0x2f3   : > { %v2330_v43 = vpop.f32.mrf.mxu0 }
 0x2f4   : > { %v2331_v53 = vadd.f32 %v2330_v43, %v1772_v48 }
 0x2f5   : > { %v2332_v44 = vpop.f32.mrf.mxu0 }
 0x2f6   : > { %v2333_v52 = vadd.f32 %v2332_v44, %v1776_v47 }
 0x2f7   : > { %v2334_v46 = vpop.f32.mrf.mxu0 }
 0x2f8   : > { %v2335_v37 = vadd.f32 %v2334_v46, %v1772_v48  ;;  %v2526_v48 = vrot.slane %v2521_v45, %v4805_v8  ;;  %v4300_v8 = vld [vmem:[%s5087_s11 + $0x18] sm:$0xff]  }
 0x2f9   : > { %v2336_v50 = vpop.f32.mrf.mxu0 }
 0x2fa   : > { %v2337_v55 = vadd.f32 %v2336_v50, %v1776_v47  ;;  %v2530_v47 = vrot.slane %v2521_v45, %v4811_v10 }
 0x313   : > { %v3730_v5 = vpop.f32.mrf.mxu0 }
 0x315   : > { %v3731_v9 = vpop.f32.mrf.mxu0 }
 0x316   : > { %v3732_v14 = vadd.f32 %v3731_v9, %v3730_v5  ;;  %v4302_v5 = vld [vmem:[%s5087_s11 + $0x8] sm:$0xff]   ;;  %v4303_v9 = vld [vmem:[%s5087_s11] sm:$0xff]  }
 0x317   : > { %v3733_v11 = vpop.f32.mrf.mxu0 }
 0x318   : > { %v2417_v19 = vadd.f32 %v3732_v14, %v1780_v13 }
 0x319   : > { %v3734_v1 = vpop.f32.mrf.mxu0 }
 0x31a   : > { %v3735_v16 = vadd.f32 %v3734_v1, %v3733_v11 }
 0x31c   : > { %v2420_v21 = vadd.f32 %v3735_v16, %v1780_v13  ;;  %v3677_v13 = vld [vmem:[#allocation9] ss:$0 sm:$0xff] }
 0x330   : > { %v2373_v49 = vpop.f32.mrf.mxu1 }
 0x331   : > { %v2374_v58 = vadd.f32 %v2373_v49, %v2331_v53 }
 0x332   : > { %v2375_v51 = vpop.f32.mrf.mxu1 }
 0x333   : > { %v2376_v56 = vadd.f32 %v2375_v51, %v2333_v52  ;;  %v2464_v2 = vmax.f32 %v2374_v58, 0.0 }
 0x334   : > { %v2377_v54 = vpop.f32.mrf.mxu1 }
 0x335   : > { %v2378_v57 = vadd.f32 %v2377_v54, %v2335_v37  ;;  %v2465_v62 = vmax.f32 %v2376_v56, 0.0 }
 0x336   : > { %v2379_v59 = vpop.f32.mrf.mxu1 }
 0x337   : > { %v2380_v60 = vadd.f32 %v2379_v59, %v2337_v55  ;;  %v2467_v61 = vmax.f32 %v2378_v57, 0.0 }
 0x339   : > { %v2468_v63 = vmax.f32 %v2380_v60, 0.0  ;;  %v2470_v4 = vpack.c.bf16 %v2467_v61, %v2464_v2 }
 0x33b   : > { %v2471_v3 = vpack.c.bf16 %v2468_v63, %v2465_v62 }
 0x33d   : > { %2805 = vmatprep.mubr.bf16.mxu0 %v2471_v3 }
 0x33e   : > { %2806 = vmatmul.mubr.bf16.vlgmr.msra.gmra.mxu0 %v2470_v4  ;;  %v4301_v4 = vld [vmem:[%s5087_s11 + $0x10] sm:$0xff]  }
 0x33f   : > { %3810 = vmatprep.mubr.msk.bf16.mxu0 %vm4556_vm0, %v4555_v0  ;;  %3803 = vmatpush3.bf16.msra.mxu0 %v4300_v8 }
 0x340   : > { %3804 = vmatprep.subr.bf16.mxu0 %v4555_v0 }
 0x343   : > { %3805 = vmatpush3.bf16.msra.mxu0 %v4301_v4 }
 0x344   : > { %3806 = vmatprep.subr.bf16.mxu0 %v4555_v0 }
 0x347   : > { %3807 = vmatpush3.bf16.msra.mxu0 %v4302_v5 }
 0x348   : > { %3808 = vmatprep.subr.bf16.mxu0 %v4555_v0 }
 0x34b   : > { %3809 = vmatpush3.bf16.msra.mxu0 %v4303_v9 }
 0x350   : > { %v3752_v12 = vpop.f32.mrf.mxu1 }
 0x352   : > { %v3753_v15 = vpop.f32.mrf.mxu1 }
 0x353   : > { %v3754_v17 = vadd.f32 %v3753_v15, %v3752_v12 }
 0x354   : > { %v3755_v18 = vpop.f32.mrf.mxu1 }
 0x355   : > { %v2458_v22 = vadd.f32 %v3754_v17, %v2417_v19 }
 0x356   : > { %v3756_v20 = vpop.f32.mrf.mxu1 }
 0x357   : > { %v3757_v23 = vadd.f32 %v3756_v20, %v3755_v18  ;;  %v2466_v25 = vmax.f32 %v2458_v22, 0.0  ;;  %v4304_v22 = vld [vmem:[%s5089_s13 + $0x8] sm:$0xff]  }
 0x359   : > { %v2461_v24 = vadd.f32 %v3757_v23, %v2420_v21  ;;  %v4305_v23 = vld [vmem:[%s5089_s13] sm:$0xff]  }
 0x35b   : > { %v2469_v26 = vmax.f32 %v2461_v24, 0.0  ;;  %v3694_v24 = vld [vmem:[#allocation10] ss:$0 sm:$0xff] }
 0x35d   : > { %v2472_v27 = vpack.c.bf16 %v2469_v26, %v2466_v25 }
 0x35f   : > { %2849 = vmatmul.mubr.bf16.vlgmr.msra.gmra.mxu1 %v2472_v27 }
 0x360   : > { %3759 = vmatpush3.bf16.msra.mxu1 %v4285_v7 }
 0x361   : > { %3760 = vmatprep.subr.bf16.mxu1 %v4286_v29 }
 0x364   : > { %3761 = vmatpush3.bf16.msra.mxu1 %v4287_v30 }
 0x365   : > { %3762 = vmatprep.subr.bf16.mxu1 %v4288_v31 }
 0x368   : > { %3763 = vmatpush3.bf16.msra.mxu1 %v4289_v32 }
 0x369   : > { %3764 = vmatprep.subr.bf16.mxu1 %v4290_v33  ;;  %v4306_v33 = vld [vmem:[%s5091_s15] sm:$0xff]  }
 0x36c   : > { %3765 = vmatpush3.bf16.msra.mxu1 %v4291_v6  ;;  %v3700_v6 = vld [vmem:[#allocation12] ss:$0 sm:$0xff] }
 0x36d   : > { %3766 = vmatprep.subr.bf16.mxu1 %v4292_v35 }
 0x370   : > { %3767 = vmatpush3.bf16.msra.mxu1 %v4293_v36 }
 0x371   : > { %3768 = vmatprep.subr.bf16.mxu1 %v4294_v38 }
 0x374   : > { %3769 = vmatpush3.bf16.msra.mxu1 %v4295_v39 }
 0x375   : > { %3770 = vmatprep.subr.bf16.mxu1 %v4296_v34 }
 0x378   : > { %3771 = vmatpush3.bf16.msra.mxu1 %v4297_v40 }
 0x379   : > { %3772 = vmatprep.subr.bf16.mxu1 %v4298_v41 }
 0x37c   : > { %3773 = vmatpush3.bf16.msra.mxu1 %v4299_v42 }
 0x37d   : > { %3814 = vmatprep.subr.bf16.mxu1 %v4555_v0 }
 0x3fe   : > { %v2807_v43 = vpop.f32.mrf.mxu0 }
 0x3ff   : > { %v2808_v53 = vadd.f32 %v2807_v43, %v2526_v48 }
 0x400   : > { %v2809_v44 = vpop.f32.mrf.mxu0 }
 0x401   : > { %v2810_v52 = vadd.f32 %v2809_v44, %v2530_v47  ;;  %v3704_v44 = vld [vmem:[#allocation13] ss:$0 sm:$0xff] }
 0x402   : > { %v2811_v46 = vpop.f32.mrf.mxu0 }
 0x403   : > { %v2812_v37 = vadd.f32 %v2811_v46, %v2526_v48 }
 0x404   : > { %v2813_v50 = vpop.f32.mrf.mxu0 }
 0x405   : > { %v2814_v55 = vadd.f32 %v2813_v50, %v2530_v47 }
 0x41f   : > { %v2850_v49 = vpop.f32.mrf.mxu1 }
 0x420   : > { %v2851_v58 = vadd.f32 %v2850_v49, %v2808_v53 }
 0x421   : > { %v2852_v51 = vpop.f32.mrf.mxu1 }
 0x422   : > { %v2853_v56 = vadd.f32 %v2852_v51, %v2810_v52  ;;  %v2859_v2 = vmax.f32 %v2851_v58, 0.0 }
 0x423   : > { %v2854_v54 = vpop.f32.mrf.mxu1 }
 0x424   : > { %v2855_v57 = vadd.f32 %v2854_v54, %v2812_v37  ;;  %v2860_v62 = vmax.f32 %v2853_v56, 0.0 }
 0x425   : > { %v2856_v59 = vpop.f32.mrf.mxu1 }
 0x426   : > { %v2857_v60 = vadd.f32 %v2856_v59, %v2814_v55  ;;  %v2861_v61 = vmax.f32 %v2855_v57, 0.0 }
 0x428   : > { %v2862_v63 = vmax.f32 %v2857_v60, 0.0  ;;  %v2863_v3 = vpack.c.bf16 %v2861_v61, %v2859_v2 }
 0x42a   : > { %v2864_v10 = vpack.c.bf16 %v2862_v63, %v2860_v62 }
 0x42c   : > { %3032 = vmatprep.mubr.bf16.mxu1 %v2864_v10 }
 0x42d   : > { %3033 = vmatmul.mubr.bf16.vlgmr.msra.gmra.mxu1 %v2863_v3 }
 0x42e   : > { %3818 = vmatprep.mubr.msk.bf16.mxu1 %vm4556_vm0, %v4555_v0  ;;  %3815 = vmatpush3.bf16.msra.mxu1 %v4304_v22 }
 0x42f   : > { %3816 = vmatprep.subr.bf16.mxu1 %v4555_v0 }
 0x432   : > { %3817 = vmatpush3.bf16.msra.mxu1 %v4305_v23 }
 0x433   : > { %3822 = vmatprep.subr.bf16.mxu1 %v4555_v0 }
 0x4ed   : > { %v3774_v11 = vpop.f32.mrf.mxu1 }
 0x4ef   : > { %v3775_v1 = vpop.f32.mrf.mxu1 }
 0x4f0   : > { %v3776_v12 = vadd.f32 %v3775_v1, %v3774_v11 }
 0x4f1   : > { %v3777_v14 = vpop.f32.mrf.mxu1 }
 0x4f2   : > { %v3035_v16 = vadd.f32 %v3776_v12, %v3677_v13 }
 0x4f3   : > { %v3778_v15 = vpop.f32.mrf.mxu1 }
 0x4f4   : > { %v3779_v17 = vadd.f32 %v3778_v15, %v3777_v14  ;;  %v3041_v19 = vmax.f32 %v3035_v16, 0.0 }
 0x4f6   : > { %v3038_v18 = vadd.f32 %v3779_v17, %v3677_v13 }
 0x4f8   : > { %v3042_v20 = vmax.f32 %v3038_v18, 0.0 }
 0x4fa   : > { %v3043_v21 = vpack.c.bf16 %v3042_v20, %v3041_v19 }
 0x4fc   : > { %3811 = vmatmul.mubr.msk.bf16.vlgmr.msra.gmra.mxu0 %vm760_vm1, %v3043_v21 }
 0x5bc   : > { %v3120_v25 = vpop.f32.mrf.mxu0 }
 0x5bd   : > { %v3121_v27 = vadd.f32 %v3694_v24, %v3120_v25 }
 0x5be   : > { %v3812_v26 = vpop.f32.mrf.mxu0 }
 0x5bf   : > { %v3127_v30 = vmax.f32 %v3121_v27, 0.0 }
 0x5c0   : > { %v3123_v28 = vpop.f32.mrf.mxu0 }
 0x5c1   : > { %v3124_v7 = vadd.f32 %v3694_v24, %v3123_v28 }
 0x5c2   : > { %v3813_v29 = vpop.f32.mrf.mxu0 }
 0x5c3   : > { %v3128_v31 = vmax.f32 %v3124_v7, 0.0 }
 0x5c5   : > { %v3129_v32 = vpack.c.bf16 %v3128_v31, %v3127_v30 }
 0x5c7   : > { %3819 = vmatmul.mubr.msk.bf16.vlgmr.msra.gmra.mxu1 %vm3153_vm2, %v3129_v32 }
 0x5c8   : > { %3824 = vmatprep.mubr.msk.bf16.mxu1 %vm4556_vm0, %v4555_v0  ;;  %3823 = vmatpush3.bf16.msra.mxu1 %v4306_v33 }
 0x687   : > { %v3191_v35 = vpop.f32.mrf.mxu1 }
 0x688   : > { %v3192_v38 = vadd.f32 %v3700_v6, %v3191_v35 }
 0x689   : > { %v3820_v36 = vpop.f32.mrf.mxu1 }
 0x68a   : > { %v3198_v41 = vmax.f32 %v3192_v38, 0.0 }
 0x68b   : > { %v3194_v39 = vpop.f32.mrf.mxu1 }
 0x68c   : > { %v3195_v34 = vadd.f32 %v3700_v6, %v3194_v39 }
 0x68d   : > { %v3821_v40 = vpop.f32.mrf.mxu1 }
 0x68e   : > { %v3199_v42 = vmax.f32 %v3195_v34, 0.0 }
 0x690   : > { %v3200_v43 = vpack.c.bf16 %v3199_v42, %v3198_v41 }
 0x692   : > { %3825 = vmatmul.mubr.msk.bf16.vlgmr.msra.gmra.mxu1 %vm3216_vm3, %v3200_v43 }
 0x752   : > { %v3254_v0 = vpop.f32.mrf.mxu1 }
 0x753   : > { %v3255_v45 = vadd.f32 %v3704_v44, %v3254_v0 }
 0x754   : > { %v3826_v46 = vpop.f32.mrf.mxu1 }
 0x755   : > { %3261 = vst [vmem:[%s657_s26] sm:$0xff] %v3255_v45 }
 0x756   : > { %v3257_v47 = vpop.f32.mrf.mxu1 }
 0x757   : > { %v3258_v48 = vadd.f32 %v3704_v44, %v3257_v47 }
 0x758   : > { %v3827_v49 = vpop.f32.mrf.mxu1 }
 0x759   : > { %3262 = vst [vmem:[%s657_s26 + $0x8] sm:$0xff] %v3258_v48 }
 0x75a PF: > { %s32_s24 = sadd.s32 1, %s4541_s24  }
 0x75b   : > { %p29_p6 = scmp.ge.s32.totalorder %s32_s24, 6  }
 0x75d   :  { %31 = sbr.rel (!%p29_p6) target bundleno = 8 (0x8), region = 151 }
 0x762   :  { %3285 = vsyncpa [#allocation3], 1 }
 0x763   :  { %3287 = vsyncpa [#allocation3 + $0x1], 1 }
 0x764   :  { %3288 = vsyncpa [#allocation5], 1 }
 0x765   :  { %3289 = vsyncpa [#allocation8], 1 }
 0x766   :  { %3290 = vsyncpa [#allocation11], 1 }
 0x767   :  { %3291 = vsyncpa [#allocation14], 1 }

</bundles_post_ra>
